<compile_context>
chip_gen: v6e
topology: v6e:2x2x1
jax: 0.10.0
libtpu: 0.0.40
codegen_flags: <defaults>
</compile_context>

<pallas_src>
import jax
import jax.numpy as jnp
from jax.experimental import pallas as pl
from jax.experimental.pallas import tpu as pltpu

LANE = 128
SUBLANE = 8
H1_PAD = 1024   # 1000 padded up to a multiple of 256
H2_PAD = 512    # 500  padded up to a multiple of 256


def _round_up(x, m):
    return ((x + m - 1) // m) * m


def _cdiv(a, b):
    return (a + b - 1) // b


def _choose_batch_tile(B, batch_tile):
    """Pick (TB, B_pad) so that: TB is a multiple of 8, the batch splits into
    at least 2 tiles whenever it can (v7x megacore), and the padded tail of
    the last tile is small (no >TB/2 worth of zero-row matmul work)."""
    B8 = _round_up(B, SUBLANE)
    min_tiles = 2 if B8 >= 2 * SUBLANE else 1
    n_tiles = max(_cdiv(B8, batch_tile), min_tiles)
    TB = _round_up(_cdiv(B8, n_tiles), SUBLANE)
    B_pad = _round_up(B8, TB)
    return TB, B_pad


def classifier_kernel(x_ref, w1_ref, b1_ref, w2_ref, b2_ref, w3_ref, b3_ref, o_ref):
    # fc1 + ReLU. x/w are bf16 on the MXU, accumulation + bias/ReLU in f32,
    # then the activation is staged back to bf16 (halves spill traffic).
    h1 = jnp.dot(x_ref[...], w1_ref[...], preferred_element_type=jnp.float32)
    h1 = jnp.maximum(h1 + b1_ref[...], 0.0).astype(jnp.bfloat16)

    # fc2 + ReLU
    h2 = jnp.dot(h1, w2_ref[...], preferred_element_type=jnp.float32)
    h2 = jnp.maximum(h2 + b2_ref[...], 0.0).astype(jnp.bfloat16)

    # fc3 (padded class columns carry a -1e30 bias -> exp == 0 below)
    logits = jnp.dot(h2, w3_ref[...], preferred_element_type=jnp.float32) + b3_ref[...]

    # numerically stable softmax over the lane-dense (128-wide) class axis
    m = jnp.max(logits, axis=-1, keepdims=True)
    e = jnp.exp(logits - m)
    denom = jnp.sum(e, axis=-1, keepdims=True)
    # approx reciprocal runs on the (otherwise idle) EUP; one Newton step
    # restores ~f32 accuracy at negligible VPU cost.
    inv = pl.reciprocal(denom, approx=True)
    inv = inv * (2.0 - denom * inv)
    o_ref[...] = (e * inv).astype(o_ref.dtype)


def classifier_forward(x, params, *, batch_tile=1024):
    """x: [B, input_dim] f32.  params: (w1, b1, w2, b2, w3, b3) with
    w_i shaped [in, out] (transpose of torch's [out, in]) and 1-D biases."""
    w1, b1, w2, b2, w3, b3 = params
    B, D = x.shape
    H1, H2, C = w1.shape[1], w2.shape[1], w3.shape[1]

    D_pad = _round_up(D, LANE)
    C_pad = _round_up(C, LANE)
    TB, B_pad = _choose_batch_tile(B, batch_tile)

    # --- one-time layout plumbing outside the kernel ---
    # x padded and pre-cast to bf16: halves the per-tile HBM stream + VMEM
    # double-buffer footprint; weights are bf16 already so numerics unchanged.
    xp = jnp.pad(x, ((0, B_pad - B), (0, D_pad - D))).astype(jnp.bfloat16)
    w1p = jnp.pad(w1, ((0, D_pad - D), (0, H1_PAD - H1))).astype(jnp.bfloat16)
    b1p = jnp.pad(b1.reshape(1, -1), ((0, 0), (0, H1_PAD - H1)))
    w2p = jnp.pad(w2, ((0, H1_PAD - H1), (0, H2_PAD - H2))).astype(jnp.bfloat16)
    b2p = jnp.pad(b2.reshape(1, -1), ((0, 0), (0, H2_PAD - H2)))
    w3p = jnp.pad(w3, ((0, H2_PAD - H2), (0, C_pad - C))).astype(jnp.bfloat16)
    # padded (fake) classes get a hugely negative bias so softmax ignores them
    b3p = jnp.pad(b3.reshape(1, -1), ((0, 0), (0, C_pad - C)),
                  constant_values=-1e30)

    grid = (B_pad // TB,)

    def resident(shape):
        # Constant block index across all batch tiles + single buffering:
        # weights/biases are fetched once and stay resident in VMEM.
        nd = len(shape)
        return pl.BlockSpec(shape, lambda i, _nd=nd: (0,) * _nd,
                            pipeline_mode=pl.Buffered(1))

    out = pl.pallas_call(
        classifier_kernel,
        out_shape=jax.ShapeDtypeStruct((B_pad, C_pad), jnp.float32),
        grid=grid,
        in_specs=[
            pl.BlockSpec((TB, D_pad), lambda i: (i, 0)),   # x: tiled over batch
            resident((D_pad, H1_PAD)), resident((1, H1_PAD)),
            resident((H1_PAD, H2_PAD)), resident((1, H2_PAD)),
            resident((H2_PAD, C_pad)), resident((1, C_pad)),
        ],
        out_specs=pl.BlockSpec((TB, C_pad), lambda i: (i, 0)),
        compiler_params=pltpu.CompilerParams(
            dimension_semantics=("parallel",),   # batch tiles shard across TCs (v7x)
            vmem_limit_bytes=32 << 20,           # fits TB=1024 tiles; safe on v7x
        ),
    )(xp, w1p, b1p, w2p, b2p, w3p, b3p)

    return out[:B, :C]


def init_params(key, input_dim, num_classes):
    k1, k2, k3, k4, k5, k6 = jax.random.split(key, 6)

    # Kaiming-uniform-ish deterministic init (bound = 1/sqrt(fan_in)), like nn.Linear.
    def lin(kw, kb, fan_in, fan_out):
        bound = 1.0 / jnp.sqrt(fan_in)
        w = jax.random.uniform(kw, (fan_in, fan_out), jnp.float32, -bound, bound)
        b = jax.random.uniform(kb, (fan_out,), jnp.float32, -bound, bound)
        return w, b

    w1, b1 = lin(k1, k2, input_dim, 1000)
    w2, b2 = lin(k3, k4, 1000, 500)
    w3, b3 = lin(k5, k6, 500, num_classes)
    return (w1, b1, w2, b2, w3, b3)


def reference_forward(x, params):
    # Matches the kernel's dtype path (bf16 MXU inputs, f32 accumulation).
    w1, b1, w2, b2, w3, b3 = params
    bf = jnp.bfloat16
    h1 = jnp.maximum(
        jnp.dot(x.astype(bf), w1.astype(bf), preferred_element_type=jnp.float32) + b1, 0.0)
    h2 = jnp.maximum(
        jnp.dot(h1.astype(bf), w2.astype(bf), preferred_element_type=jnp.float32) + b2, 0.0)
    logits = jnp.dot(h2.astype(bf), w3.astype(bf),
                     preferred_element_type=jnp.float32) + b3
    return jax.nn.softmax(logits, axis=-1)


if __name__ == "__main__":
    key = jax.random.PRNGKey(0)
    kx, kp = jax.random.split(key)

    batch = 2
    input_dim = 32
    num_classes = 10

    x = jax.random.normal(kx, (batch, input_dim), jnp.float32)
    params = init_params(kp, input_dim, num_classes)

    out = classifier_forward(x, params)
    out = jax.block_until_ready(out)

    ref = reference_forward(x, params)
    assert out.shape == (batch, num_classes)
    assert jnp.allclose(jnp.sum(out, axis=-1), 1.0, atol=1e-3)
    assert jnp.allclose(out, ref, atol=2e-3, rtol=1e-2)

    # also exercise the multi-tile path (>= 2 tiles, ragged batch) once
    x_big = jax.random.normal(kx, (300, input_dim), jnp.float32)
    out_big = jax.block_until_ready(classifier_forward(x_big, params))
    ref_big = reference_forward(x_big, params)
    assert out_big.shape == (300, num_classes)
    assert jnp.allclose(out_big, ref_big, atol=2e-3, rtol=1e-2)

    print("KERNEL_OK")
</pallas_src>

<mosaic_0001>
module attributes {stable_mosaic.version = 11 : i64} {
  func.func @classifier_kernel(%arg0: i32, %arg1: memref<8x128xbf16, #tpu.memory_space<vmem>>, %arg2: memref<128x1024xbf16, #tpu.memory_space<vmem>>, %arg3: memref<1x1024xf32, #tpu.memory_space<vmem>>, %arg4: memref<1024x512xbf16, #tpu.memory_space<vmem>>, %arg5: memref<1x512xf32, #tpu.memory_space<vmem>>, %arg6: memref<512x128xbf16, #tpu.memory_space<vmem>>, %arg7: memref<1x128xf32, #tpu.memory_space<vmem>>, %arg8: memref<8x128xf32, #tpu.memory_space<vmem>>) attributes {dimension_semantics = [#tpu.dimension_semantics<parallel>], iteration_bounds = array<i64: 1>, scalar_prefetch = 0 : i64, scratch_operands = 0 : i64, tpu.core_type = #tpu.core_type<tc>, window_params = [{transform_indices = @transform_0, window_bounds = array<i64: 8, 128>}, {pipeline_mode = #tpu.pipeline_mode<synchronous>, transform_indices = @transform_1, window_bounds = array<i64: 128, 1024>}, {pipeline_mode = #tpu.pipeline_mode<synchronous>, transform_indices = @transform_2, window_bounds = array<i64: 1, 1024>}, {pipeline_mode = #tpu.pipeline_mode<synchronous>, transform_indices = @transform_3, window_bounds = array<i64: 1024, 512>}, {pipeline_mode = #tpu.pipeline_mode<synchronous>, transform_indices = @transform_4, window_bounds = array<i64: 1, 512>}, {pipeline_mode = #tpu.pipeline_mode<synchronous>, transform_indices = @transform_5, window_bounds = array<i64: 512, 128>}, {pipeline_mode = #tpu.pipeline_mode<synchronous>, transform_indices = @transform_6, window_bounds = array<i64: 1, 128>}, {transform_indices = @transform_7, window_bounds = array<i64: 8, 128>}]} {
    %c0 = arith.constant 0 : index
    %c0_0 = arith.constant 0 : index
    %0 = vector.load %arg1[%c0, %c0_0] : memref<8x128xbf16, #tpu.memory_space<vmem>>, vector<8x128xbf16>
    %c0_1 = arith.constant 0 : index
    %c0_2 = arith.constant 0 : index
    %1 = vector.load %arg2[%c0_1, %c0_2] : memref<128x1024xbf16, #tpu.memory_space<vmem>>, vector<128x1024xbf16>
    %cst = arith.constant dense<0.000000e+00> : vector<8x1024xf32>
    %2 = tpu.matmul %0, %1, %cst {dimension_numbers = #tpu.dot_dimension_numbers<[1], [0], [0], [1], [0, 0, 1, 1], [], []>} : vector<8x128xbf16>, vector<128x1024xbf16>, vector<8x1024xf32> -> vector<8x1024xf32>
    %c0_3 = arith.constant 0 : index
    %c0_4 = arith.constant 0 : index
    %3 = vector.load %arg3[%c0_3, %c0_4] : memref<1x1024xf32, #tpu.memory_space<vmem>>, vector<1x1024xf32>
    %4 = vector.broadcast %3 : vector<1x1024xf32> to vector<8x1024xf32>
    %5 = arith.addf %2, %4 : vector<8x1024xf32>
    %cst_5 = arith.constant 0.000000e+00 : f32
    %6 = vector.broadcast %cst_5 : f32 to vector<8x1024xf32>
    %7 = arith.maximumf %5, %6 : vector<8x1024xf32>
    %8 = arith.truncf %7 : vector<8x1024xf32> to vector<8x1024xbf16>
    %c0_6 = arith.constant 0 : index
    %c0_7 = arith.constant 0 : index
    %9 = vector.load %arg4[%c0_6, %c0_7] : memref<1024x512xbf16, #tpu.memory_space<vmem>>, vector<1024x512xbf16>
    %cst_8 = arith.constant dense<0.000000e+00> : vector<8x512xf32>
    %10 = tpu.matmul %8, %9, %cst_8 {dimension_numbers = #tpu.dot_dimension_numbers<[1], [0], [0], [1], [0, 0, 1, 1], [], []>} : vector<8x1024xbf16>, vector<1024x512xbf16>, vector<8x512xf32> -> vector<8x512xf32>
    %c0_9 = arith.constant 0 : index
    %c0_10 = arith.constant 0 : index
    %11 = vector.load %arg5[%c0_9, %c0_10] : memref<1x512xf32, #tpu.memory_space<vmem>>, vector<1x512xf32>
    %12 = vector.broadcast %11 : vector<1x512xf32> to vector<8x512xf32>
    %13 = arith.addf %10, %12 : vector<8x512xf32>
    %cst_11 = arith.constant 0.000000e+00 : f32
    %14 = vector.broadcast %cst_11 : f32 to vector<8x512xf32>
    %15 = arith.maximumf %13, %14 : vector<8x512xf32>
    %16 = arith.truncf %15 : vector<8x512xf32> to vector<8x512xbf16>
    %c0_12 = arith.constant 0 : index
    %c0_13 = arith.constant 0 : index
    %17 = vector.load %arg6[%c0_12, %c0_13] : memref<512x128xbf16, #tpu.memory_space<vmem>>, vector<512x128xbf16>
    %cst_14 = arith.constant dense<0.000000e+00> : vector<8x128xf32>
    %18 = tpu.matmul %16, %17, %cst_14 {dimension_numbers = #tpu.dot_dimension_numbers<[1], [0], [0], [1], [0, 0, 1, 1], [], []>} : vector<8x512xbf16>, vector<512x128xbf16>, vector<8x128xf32> -> vector<8x128xf32>
    %c0_15 = arith.constant 0 : index
    %c0_16 = arith.constant 0 : index
    %19 = vector.load %arg7[%c0_15, %c0_16] : memref<1x128xf32, #tpu.memory_space<vmem>>, vector<1x128xf32>
    %20 = vector.broadcast %19 : vector<1x128xf32> to vector<8x128xf32>
    %21 = arith.addf %18, %20 : vector<8x128xf32>
    %cst_17 = arith.constant dense<0xFF800000> : vector<8xf32>
    %22 = vector.multi_reduction <maximumf>, %21, %cst_17 [1] : vector<8x128xf32> to vector<8xf32>
    %23 = vector.shape_cast %22 : vector<8xf32> to vector<8x1xf32>
    %24 = vector.broadcast %23 : vector<8x1xf32> to vector<8x128xf32>
    %25 = arith.subf %21, %24 : vector<8x128xf32>
    %26 = math.exp %25 : vector<8x128xf32>
    %cst_18 = arith.constant dense<0.000000e+00> : vector<8xf32>
    %27 = vector.multi_reduction <add>, %26, %cst_18 [1] : vector<8x128xf32> to vector<8xf32>
    %28 = vector.shape_cast %27 : vector<8xf32> to vector<8x1xf32>
    %29 = tpu.reciprocal %28 {approx = true} : vector<8x1xf32> -> vector<8x1xf32>
    %30 = arith.mulf %28, %29 : vector<8x1xf32>
    %cst_19 = arith.constant 2.000000e+00 : f32
    %31 = vector.broadcast %cst_19 : f32 to vector<8x1xf32>
    %32 = arith.subf %31, %30 : vector<8x1xf32>
    %33 = arith.mulf %29, %32 : vector<8x1xf32>
    %34 = vector.broadcast %33 : vector<8x1xf32> to vector<8x128xf32>
    %35 = arith.mulf %26, %34 : vector<8x128xf32>
    %c0_20 = arith.constant 0 : index
    %c0_21 = arith.constant 0 : index
    %36 = vector.load %arg8[%c0_20, %c0_21] : memref<8x128xf32, #tpu.memory_space<vmem>>, vector<8x128xf32>
    tpu.vector_store %arg8[%c0_20, %c0_21], %35 {strides = array<i32>} : memref<8x128xf32, #tpu.memory_space<vmem>>, vector<8x128xf32>,
    return
  }
  func.func @transform_0(%arg0: i32) -> (i32, i32) {
    %c0_i32 = arith.constant 0 : i32
    %c0_i32_0 = arith.constant 0 : i32
    return %arg0, %c0_i32 : i32, i32
  }
  func.func @transform_1(%arg0: i32) -> (i32, i32) {
    %c0_i32 = arith.constant 0 : i32
    %c0_i32_0 = arith.constant 0 : i32
    %c0_i32_1 = arith.constant 0 : i32
    return %c0_i32, %c0_i32_0 : i32, i32
  }
  func.func @transform_2(%arg0: i32) -> (i32, i32) {
    %c0_i32 = arith.constant 0 : i32
    %c0_i32_0 = arith.constant 0 : i32
    %c0_i32_1 = arith.constant 0 : i32
    return %c0_i32, %c0_i32_0 : i32, i32
  }
  func.func @transform_3(%arg0: i32) -> (i32, i32) {
    %c0_i32 = arith.constant 0 : i32
    %c0_i32_0 = arith.constant 0 : i32
    %c0_i32_1 = arith.constant 0 : i32
    return %c0_i32, %c0_i32_0 : i32, i32
  }
  func.func @transform_4(%arg0: i32) -> (i32, i32) {
    %c0_i32 = arith.constant 0 : i32
    %c0_i32_0 = arith.constant 0 : i32
    %c0_i32_1 = arith.constant 0 : i32
    return %c0_i32, %c0_i32_0 : i32, i32
  }
  func.func @transform_5(%arg0: i32) -> (i32, i32) {
    %c0_i32 = arith.constant 0 : i32
    %c0_i32_0 = arith.constant 0 : i32
    %c0_i32_1 = arith.constant 0 : i32
    return %c0_i32, %c0_i32_0 : i32, i32
  }
  func.func @transform_6(%arg0: i32) -> (i32, i32) {
    %c0_i32 = arith.constant 0 : i32
    %c0_i32_0 = arith.constant 0 : i32
    %c0_i32_1 = arith.constant 0 : i32
    return %c0_i32, %c0_i32_0 : i32, i32
  }
  func.func @transform_7(%arg0: i32) -> (i32, i32) {
    %c0_i32 = arith.constant 0 : i32
    %c0_i32_0 = arith.constant 0 : i32
    return %arg0, %c0_i32 : i32, i32
  }
}

</mosaic_0001>

<bundles_post_ra>
// kernel: tpu_custom_call.1
= control target key start
LH: loop header
LB: loop body
LE: loop exit
PB: predicated region body
PF: predicated region fallthrough
CT: control target
= control target key end

     0   :  { %12 = vsyncpa [#allocation3], 0  ;;  %s4085_s0 = inlined_call_operand.hbm [shape: bf16[8,128], index: 0, kind: input, shape index: {}]   ;;  %s4086_s1 = inlined_call_operand.hbm [shape: bf16[128,1024], index: 1, kind: input, shape index: {}]   ;;  %s4087_s2 = inlined_call_operand.hbm [shape: f32[1,1024], index: 2, kind: input, shape index: {}]   ;;  %s4088_s3 = inlined_call_operand.hbm [shape: bf16[1024,512], index: 3, kind: input, shape index: {}]   ;;  %s4089_s4 = inlined_call_operand.vmem [shape: f32[1,512], index: 4, kind: input, shape index: {}]   ;;  %s4090_s5 = inlined_call_operand.hbm [shape: bf16[512,128], index: 5, kind: input, shape index: {}]   ;;  %s4091_s6 = inlined_call_operand.vmem [shape: f32[1,128], index: 6, kind: input, shape index: {}]   ;;  %s4092_s7 = inlined_call_operand.hbm [shape: f32[8,128], index: 7, kind: output, shape index: {}]  }
   0x1   :  { %13 = vsyncpa [#allocation6], 0 }
   0x2   :  { %14 = vsyncpa [#allocation9], 0 }
   0x3   :  { %15 = vsyncpa [#allocation4], 0  ;;  %s3924_s24 = smov [#allocation5]  }
   0x4   :  { %s31_s25 = sshll.u32 %s3924_s24, 4  ;;  %s32_s25 = int_to_ptr.vmem [resolvable:$true] %s31_s25 }
   0x5   :  { %s3804_s26 = scalar_lea.vmem %s32_s25, 8192  ;;  %p3809_p1 = scmp.lt.s32.totalorder %s32_s25, %s32_s25 }
   0x6   :  { %p3805_p0 = scmp.ne.s32.totalorder %s32_s25, %s3804_s26  ;;  %p3810_p2 = scmp.lt.s32.totalorder %s3804_s26, %s3804_s26 }
   0x8   :  { %p3811_p3 = por %p3810_p2, %p3809_p1 }
   0xa   :  { %p3812_p4 = pnand %p3811_p3, %p3805_p0 }
   0xc   :  { %3815 = shalt.err (!%p3812_p4)
}
   0xd   :  { %s3925_s27 = smov 512   ;;  %s3926_s28 = smov 32  }
   0xe   :  { %37 = dma.hbm_to_vmem [thread:$0]  %s4086_s1, 8192, %s32_s25, [#allocation6], %s3925_s27, %s3925_s27, %s3926_s28  }
   0xf   :  { %s3927_s8 = smov [#allocation8]  }
  0x10   :  { %s53_s9 = sshll.u32 %s3927_s8, 4  ;;  %s54_s9 = int_to_ptr.vmem [resolvable:$true] %s53_s9 }
  0x11   :  { %s3824_s10 = scalar_lea.vmem %s54_s9, 32768  ;;  %p3829_p6 = scmp.lt.s32.totalorder %s54_s9, %s54_s9 }
  0x12   :  { %p3825_p5 = scmp.ne.s32.totalorder %s54_s9, %s3824_s10  ;;  %p3830_p7 = scmp.lt.s32.totalorder %s3824_s10, %s3824_s10 }
  0x14   :  { %p3831_p8 = por %p3830_p7, %p3829_p6 }
  0x16   :  { %p3832_p9 = pnand %p3831_p8, %p3825_p5 }
  0x18   :  { %3835 = shalt.err (!%p3832_p9)
}
  0x19   :  { %s3928_s11 = smov 256   ;;  %s3929_s12 = smov 16  }
  0x1a   :  { %59 = dma.hbm_to_vmem [thread:$0]  %s4088_s3, 32768, %s54_s9, [#allocation9], %s3928_s11, %s3928_s11, %s3929_s12  }
  0x1b   :  { %s3930_s15 = smov [#allocation2]   ;;  %s3931_s17 = smov [#allocation7]  }
  0x1c   :  { %s22_s16 = sshll.u32 %s3930_s15, 4  ;;  %s44_s1 = sshll.u32 %s3931_s17, 4  ;;  %s23_s16 = int_to_ptr.vmem [resolvable:$true] %s22_s16  ;;  %s45_s1 = int_to_ptr.vmem [resolvable:$true] %s44_s1 }
  0x1d   :  { %s3844_s18 = scalar_lea.vmem %s23_s16, 64  ;;  %p3849_p11 = scmp.lt.s32.totalorder %s23_s16, %s23_s16 }
  0x1e   :  { %p3845_p10 = scmp.ne.s32.totalorder %s23_s16, %s3844_s18  ;;  %p3850_p12 = scmp.lt.s32.totalorder %s3844_s18, %s3844_s18 }
  0x20   :  { %p3851_p13 = por %p3850_p12, %p3849_p11 }
  0x22   :  { %p3852_p0 = pnand %p3851_p13, %p3845_p10 }
  0x24   :  { %3855 = shalt.err (!%p3852_p0)
}
  0x25   :  { %25 = dma.hbm_to_vmem [thread:$0]  %s4085_s0, 64, %s23_s16, [#allocation3]  }
  0x26   :  { %s3864_s21 = scalar_lea.vmem %s45_s1, 128  ;;  %p3869_p2 = scmp.lt.s32.totalorder %s45_s1, %s45_s1 }
  0x27   :  { %p3865_p1 = scmp.ne.s32.totalorder %s45_s1, %s3864_s21  ;;  %p3870_p3 = scmp.lt.s32.totalorder %s3864_s21, %s3864_s21 }
  0x29   :  { %p3871_p4 = por %p3870_p3, %p3869_p2 }
  0x2b   :  { %p3872_p5 = pnand %p3871_p4, %p3865_p1 }
  0x2d   :  { %3875 = shalt.err (!%p3872_p5)
}
  0x2e   :  { %47 = dma.hbm_to_vmem [thread:$0]  %s4087_s2, 128, %s45_s1, [#allocation6]  }
  0x2f   :  { %s3932_s23 = smov [#allocation10]  }
  0x30   :  { %s67_s24 = sshll.u32 %s3932_s23, 4  ;;  %s68_s24 = int_to_ptr.vmem [resolvable:$true] %s67_s24 }
  0x31   :  { %s3884_s25 = scalar_lea.vmem %s68_s24, 4096  ;;  %p3889_p7 = scmp.lt.s32.totalorder %s68_s24, %s68_s24 }
  0x32   :  { %p3885_p6 = scmp.ne.s32.totalorder %s68_s24, %s3884_s25  ;;  %p3890_p8 = scmp.lt.s32.totalorder %s3884_s25, %s3884_s25 }
  0x34   :  { %p3891_p9 = por %p3890_p8, %p3889_p7 }
  0x36   :  { %p3892_p10 = pnand %p3891_p9, %p3885_p6 }
  0x38   :  { %3895 = shalt.err (!%p3892_p10)
}
  0x39   :  { %s3933_s0 = smov 64   ;;  %s3934_s26 = smov 4  }
  0x3a   :  { %73 = dma.hbm_to_vmem [thread:$0]  %s4090_s5, 4096, %s68_s24, [#allocation9], %s3933_s0, %s3933_s0, %s3934_s26  }
  0x3b   :  { %3916 = dma.done.wait [#allocation3], 64  }
  0x3c   :  { %3917 = vsyncadd [#allocation3], 4294967232 }
  0x3d   :  { %3918 = dma.done.wait [#allocation6], 8320  }
  0x3e   :  { %3919 = vsyncadd [#allocation6], 4294958976 }
  0x3f   :  { %3920 = dma.done.wait [#allocation9], 36864  }
  0x40   :  { %3921 = vsyncadd [#allocation9], 4294930432  ;;  %v3935_v0 = vmov 0   ;;  %v149_v1 = vld [vmem:[#allocation5 + $0x1c0] sm:$0xff]  ;;  %v150_v3 = vld [vmem:[#allocation5 + $0x1c8] sm:$0xff] }
  0x41   :  { %551 = vmatprep.mubr.bf16.mxu0 %v3935_v0  ;;  %592 = vmatprep.mubr.bf16.mxu1 %v3935_v0  ;;  %v153_v2 = vld [vmem:[#allocation5 + $0x1e0] sm:$0xff]  ;;  %v154_v5 = vld [vmem:[#allocation5 + $0x1e8] sm:$0xff]  ;;  %v151_v62 = vld [vmem:[#allocation5 + $0x1d0] sm:$0xff] }
  0x42   :  { %v3023_v4 = vcombine.high %v149_v1, %v153_v2  ;;  %v3022_v6 = vcombine.low %v149_v1, %v153_v2  ;;  %v141_v7 = vld [vmem:[#allocation5 + $0x180] sm:$0xff]  ;;  %v3025_v9 = vcombine.high %v150_v3, %v154_v5  ;;  %v3024_v10 = vcombine.low %v150_v3, %v154_v5  ;;  %v142_v12 = vld [vmem:[#allocation5 + $0x188] sm:$0xff]  ;;  %v155_v1 = vld [vmem:[#allocation5 + $0x1f0] sm:$0xff] }
  0x43   :  { %v145_v8 = vld [vmem:[#allocation5 + $0x1a0] sm:$0xff]  ;;  %v146_v13 = vld [vmem:[#allocation5 + $0x1a8] sm:$0xff]  ;;  %v152_v2 = vld [vmem:[#allocation5 + $0x1d8] sm:$0xff] }
  0x44   :  { %v3015_v11 = vcombine.high %v141_v7, %v145_v8  ;;  %v133_v14 = vld [vmem:[#allocation5 + $0x140] sm:$0xff]  ;;  %519 = vmatprep.subr.bf16.mxu0 %v3023_v4  ;;  %v3017_v15 = vcombine.high %v142_v12, %v146_v13  ;;  %v134_v17 = vld [vmem:[#allocation5 + $0x148] sm:$0xff]  ;;  %560 = vmatprep.subr.bf16.mxu1 %v3025_v9  ;;  %v3014_v19 = vcombine.low %v141_v7, %v145_v8  ;;  %v156_v3 = vld [vmem:[#allocation5 + $0x1f8] sm:$0xff] }
  0x45   :  { %v137_v16 = vld [vmem:[#allocation5 + $0x160] sm:$0xff]  ;;  %v138_v18 = vld [vmem:[#allocation5 + $0x168] sm:$0xff]  ;;  %520 = vmatpush1.bf16.msra.mxu0 %v3022_v6  ;;  %561 = vmatpush1.bf16.msra.mxu1 %v3024_v10  ;;  %v3016_v20 = vcombine.low %v142_v12, %v146_v13  ;;  %v3027_v6 = vcombine.high %v151_v62, %v155_v1  ;;  %v143_v7 = vld [vmem:[#allocation5 + $0x190] sm:$0xff]  ;;  %v3029_v8 = vcombine.high %v152_v2, %v156_v3 }
  0x46   :  { %521 = vmatprep.subr.bf16.mxu0 %v3015_v11  ;;  %v3007_v21 = vcombine.high %v133_v14, %v137_v16  ;;  %562 = vmatprep.subr.bf16.mxu1 %v3017_v15  ;;  %v3009_v22 = vcombine.high %v134_v17, %v138_v18  ;;  %v125_v23 = vld [vmem:[#allocation5 + $0x100] sm:$0xff]  ;;  %v126_v25 = vld [vmem:[#allocation5 + $0x108] sm:$0xff]  ;;  %v3006_v27 = vcombine.low %v133_v14, %v137_v16  ;;  %v147_v9 = vld [vmem:[#allocation5 + $0x1b0] sm:$0xff] }
  0x47   :  { %v129_v24 = vld [vmem:[#allocation5 + $0x120] sm:$0xff]  ;;  %v130_v26 = vld [vmem:[#allocation5 + $0x128] sm:$0xff]  ;;  %v3008_v28 = vcombine.low %v134_v17, %v138_v18  ;;  %v144_v10 = vld [vmem:[#allocation5 + $0x198] sm:$0xff]  ;;  %v3026_v13 = vcombine.low %v151_v62, %v155_v1  ;;  %v3028_v14 = vcombine.low %v152_v2, %v156_v3  ;;  %v3019_v15 = vcombine.high %v143_v7, %v147_v9 }
  0x48   :  { %v2999_v29 = vcombine.high %v125_v23, %v129_v24  ;;  %v3001_v30 = vcombine.high %v126_v25, %v130_v26  ;;  %v117_v31 = vld [vmem:[#allocation5 + $0xc0] sm:$0xff]  ;;  %v118_v33 = vld [vmem:[#allocation5 + $0xc8] sm:$0xff]  ;;  %v2998_v35 = vcombine.low %v125_v23, %v129_v24  ;;  %v3000_v36 = vcombine.low %v126_v25, %v130_v26  ;;  %v148_v11 = vld [vmem:[#allocation5 + $0x1b8] sm:$0xff] }
  0x49   :  { %522 = vmatpush1.bf16.msra.mxu0 %v3014_v19  ;;  %563 = vmatpush1.bf16.msra.mxu1 %v3016_v20  ;;  %v121_v32 = vld [vmem:[#allocation5 + $0xe0] sm:$0xff]  ;;  %v122_v34 = vld [vmem:[#allocation5 + $0xe8] sm:$0xff]  ;;  %v3994_v12 = vld [vmem:[#allocation2] sm:$0xf]  ;;  %v3021_v17 = vcombine.high %v144_v10, %v148_v11 }
  0x4a   :  { %523 = vmatprep.subr.bf16.mxu0 %v3007_v21  ;;  %564 = vmatprep.subr.bf16.mxu1 %v3009_v22  ;;  %v2991_v37 = vcombine.high %v117_v31, %v121_v32  ;;  %v2993_v38 = vcombine.high %v118_v33, %v122_v34  ;;  %v109_v39 = vld [vmem:[#allocation5 + $0x80] sm:$0xff]  ;;  %v110_v41 = vld [vmem:[#allocation5 + $0x88] sm:$0xff]  ;;  %v2990_v43 = vcombine.low %v117_v31, %v121_v32  ;;  %v135_v16 = vld [vmem:[#allocation5 + $0x150] sm:$0xff] }
  0x4b   :  { %v113_v40 = vld [vmem:[#allocation5 + $0xa0] sm:$0xff]  ;;  %v114_v42 = vld [vmem:[#allocation5 + $0xa8] sm:$0xff]  ;;  %v2992_v44 = vcombine.low %v118_v33, %v122_v34  ;;  %v139_v18 = vld [vmem:[#allocation5 + $0x170] sm:$0xff]  ;;  %v3018_v21 = vcombine.low %v143_v7, %v147_v9  ;;  %v3020_v22 = vcombine.low %v144_v10, %v148_v11 }
  0x4c   :  { %v2983_v45 = vcombine.high %v109_v39, %v113_v40  ;;  %v2985_v46 = vcombine.high %v110_v41, %v114_v42  ;;  %v101_v47 = vld [vmem:[#allocation5 + $0x40] sm:$0xff]  ;;  %v102_v49 = vld [vmem:[#allocation5 + $0x48] sm:$0xff]  ;;  %v2982_v51 = vcombine.low %v109_v39, %v113_v40  ;;  %v2984_v52 = vcombine.low %v110_v41, %v114_v42  ;;  %v136_v19 = vld [vmem:[#allocation5 + $0x158] sm:$0xff] }
  0x4d   :  { %524 = vmatpush1.bf16.msra.mxu0 %v3006_v27  ;;  %565 = vmatpush1.bf16.msra.mxu1 %v3008_v28  ;;  %v105_v48 = vld [vmem:[#allocation5 + $0x60] sm:$0xff]  ;;  %v106_v50 = vld [vmem:[#allocation5 + $0x68] sm:$0xff]  ;;  %v140_v20 = vld [vmem:[#allocation5 + $0x178] sm:$0xff]  ;;  %v3011_v23 = vcombine.high %v135_v16, %v139_v18 }
  0x4e   :  { %525 = vmatprep.subr.bf16.mxu0 %v2999_v29  ;;  %566 = vmatprep.subr.bf16.mxu1 %v3001_v30  ;;  %v2975_v53 = vcombine.high %v101_v47, %v105_v48  ;;  %v93_v54 = vld [vmem:[#allocation5] sm:$0xff]  ;;  %v2977_v55 = vcombine.high %v102_v49, %v106_v50  ;;  %v94_v57 = vld [vmem:[#allocation5 + $0x8] sm:$0xff]  ;;  %v2974_v59 = vcombine.low %v101_v47, %v105_v48  ;;  %v127_v24 = vld [vmem:[#allocation5 + $0x110] sm:$0xff] }
  0x4f   :  { %v97_v56 = vld [vmem:[#allocation5 + $0x20] sm:$0xff]  ;;  %v98_v58 = vld [vmem:[#allocation5 + $0x28] sm:$0xff]  ;;  %v2976_v60 = vcombine.low %v102_v49, %v106_v50  ;;  %v3013_v25 = vcombine.high %v136_v19, %v140_v20  ;;  %v131_v26 = vld [vmem:[#allocation5 + $0x130] sm:$0xff]  ;;  %v3010_v29 = vcombine.low %v135_v16, %v139_v18  ;;  %v3012_v30 = vcombine.low %v136_v19, %v140_v20 }
  0x50   :  { %v2967_v61 = vcombine.high %v93_v54, %v97_v56  ;;  %v2969_v63 = vcombine.high %v94_v57, %v98_v58  ;;  %v2966_v4 = vcombine.low %v93_v54, %v97_v56  ;;  %v2968_v5 = vcombine.low %v94_v57, %v98_v58  ;;  %v128_v27 = vld [vmem:[#allocation5 + $0x118] sm:$0xff]  ;;  %v119_v32 = vld [vmem:[#allocation5 + $0xd0] sm:$0xff] }
  0x51   :  { %526 = vmatpush1.bf16.msra.mxu0 %v2998_v35  ;;  %567 = vmatpush1.bf16.msra.mxu1 %v3000_v36  ;;  %v132_v28 = vld [vmem:[#allocation5 + $0x138] sm:$0xff]  ;;  %v3003_v31 = vcombine.high %v127_v24, %v131_v26  ;;  %v123_v34 = vld [vmem:[#allocation5 + $0xf0] sm:$0xff] }
  0x52   :  { %527 = vmatprep.subr.bf16.mxu0 %v2991_v37  ;;  %568 = vmatprep.subr.bf16.mxu1 %v2993_v38  ;;  %v3005_v33 = vcombine.high %v128_v27, %v132_v28  ;;  %v120_v35 = vld [vmem:[#allocation5 + $0xd8] sm:$0xff]  ;;  %v3002_v37 = vcombine.low %v127_v24, %v131_v26  ;;  %v3004_v38 = vcombine.low %v128_v27, %v132_v28  ;;  %v111_v40 = vld [vmem:[#allocation5 + $0x90] sm:$0xff] }
  0x53   :  { %v124_v36 = vld [vmem:[#allocation5 + $0xf8] sm:$0xff]  ;;  %v2995_v39 = vcombine.high %v119_v32, %v123_v34  ;;  %v115_v41 = vld [vmem:[#allocation5 + $0xb0] sm:$0xff] }
  0x54   :  { %v112_v42 = vld [vmem:[#allocation5 + $0x98] sm:$0xff]  ;;  %v103_v47 = vld [vmem:[#allocation5 + $0x50] sm:$0xff] }
  0x55   :  { %528 = vmatpush1.bf16.msra.mxu0 %v2990_v43  ;;  %569 = vmatpush1.bf16.msra.mxu1 %v2992_v44  ;;  %v116_v43 = vld [vmem:[#allocation5 + $0xb8] sm:$0xff]  ;;  %v2994_v44 = vcombine.low %v119_v32, %v123_v34  ;;  %v107_v49 = vld [vmem:[#allocation5 + $0x70] sm:$0xff] }
  0x56   :  { %529 = vmatprep.subr.bf16.mxu0 %v2983_v45  ;;  %570 = vmatprep.subr.bf16.mxu1 %v2985_v46  ;;  %v2996_v45 = vcombine.low %v120_v35, %v124_v36  ;;  %v2987_v46 = vcombine.high %v111_v40, %v115_v41  ;;  %v2989_v48 = vcombine.high %v112_v42, %v116_v43  ;;  %v104_v50 = vld [vmem:[#allocation5 + $0x58] sm:$0xff]  ;;  %v99_v57 = vld [vmem:[#allocation5 + $0x30] sm:$0xff] }
  0x57   :  { %v2979_v54 = vcombine.high %v103_v47, %v107_v49  ;;  %v96_v58 = vld [vmem:[#allocation5 + $0x18] sm:$0xff] }
  0x58   :  { %v3378_v1 = vld [vmem:[#allocation8 + $0xe4] ss:$16 sps:$4 sm:$0xff]   ;;  %v3382_v9 = vld [vmem:[#allocation8 + $0xc0] ss:$16 sps:$4 sm:$0xff]  }
  0x59   :  { %530 = vmatpush1.bf16.msra.mxu0 %v2982_v51  ;;  %571 = vmatpush1.bf16.msra.mxu1 %v2984_v52  ;;  %v108_v51 = vld [vmem:[#allocation5 + $0x78] sm:$0xff]  ;;  %v2986_v52 = vcombine.low %v111_v40, %v115_v41 }
  0x5a   :  { %531 = vmatprep.subr.bf16.mxu0 %v2975_v53  ;;  %572 = vmatprep.subr.bf16.mxu1 %v2977_v55  ;;  %v2988_v53 = vcombine.low %v112_v42, %v116_v43  ;;  %v95_v55 = vld [vmem:[#allocation5 + $0x10] sm:$0xff]  ;;  %v2981_v56 = vcombine.high %v104_v50, %v108_v51  ;;  %v3381_v3 = vld [vmem:[#allocation8 + $0x2e4] ss:$16 sps:$4 sm:$0xff]   ;;  %v3385_v10 = vld [vmem:[#allocation8 + $0x2c0] ss:$16 sps:$4 sm:$0xff]  }
  0x5b   :  { %v2971_v62 = vcombine.high %v95_v55, %v99_v57  ;;  %v2970_v2 = vcombine.low %v95_v55, %v99_v57  ;;  %v3384_v7 = vld [vmem:[#allocation8 + $0xc4] ss:$16 sps:$4 sm:$0xff]   ;;  %v3394_v18 = vld [vmem:[#allocation8 + $0x80] ss:$16 sps:$4 sm:$0xff]  }
  0x5c   :  { %v3390_v11 = vld [vmem:[#allocation8 + $0xa4] ss:$16 sps:$4 sm:$0xff]   ;;  %v3397_v19 = vld [vmem:[#allocation8 + $0x280] ss:$16 sps:$4 sm:$0xff]  }
  0x5d   :  { %532 = vmatpush1.bf16.msra.mxu0 %v2974_v59  ;;  %573 = vmatpush1.bf16.msra.mxu1 %v2976_v60  ;;  %v100_v59 = vld [vmem:[#allocation5 + $0x38] sm:$0xff]  ;;  %v2978_v60 = vcombine.low %v103_v47, %v107_v49 }
  0x5e   :  { %533 = vmatprep.subr.bf16.mxu0 %v2967_v61  ;;  %574 = vmatprep.subr.bf16.mxu1 %v2969_v63  ;;  %v2980_v61 = vcombine.low %v104_v50, %v108_v51  ;;  %v2973_v63 = vcombine.high %v96_v58, %v100_v59  ;;  %v3396_v16 = vld [vmem:[#allocation8 + $0x84] ss:$16 sps:$4 sm:$0xff]   ;;  %v3409_v26 = vld [vmem:[#allocation8 + $0x240] ss:$16 sps:$4 sm:$0xff]  }
  0x5f   :  { %v3402_v20 = vld [vmem:[#allocation8 + $0x64] ss:$16 sps:$4 sm:$0xff]   ;;  %v3421_v34 = vld [vmem:[#allocation8 + $0x200] ss:$16 sps:$4 sm:$0xff]  }
  0x60   :  { %v3411_v24 = vld [vmem:[#allocation8 + $0x244] ss:$16 sps:$4 sm:$0xff]   ;;  %v3433_v41 = vld [vmem:[#allocation8 + $0x3c0] ss:$16 sps:$4 sm:$0xff]  }
  0x61   :  { %534 = vmatpush1.bf16.msra.mxu0 %v2966_v4  ;;  %575 = vmatpush1.bf16.msra.mxu1 %v2968_v5  ;;  %v2972_v4 = vcombine.low %v96_v58, %v100_v59  ;;  %v3376_v5 = vld [vmem:[#allocation8 + $0xe0] ss:$16 sps:$4 sm:$0xff]   ;;  %v3414_v27 = vld [vmem:[#allocation8 + $0x24] ss:$16 sps:$4 sm:$0xff]  }
  0x62   :  { %601 = vmatprep.subr.bf16.mxu0 %v3027_v6  ;;  %642 = vmatprep.subr.bf16.mxu1 %v3029_v8  ;;  %v3379_v6 = vld [vmem:[#allocation8 + $0x2e0] ss:$16 sps:$4 sm:$0xff]   ;;  %v3387_v8 = vld [vmem:[#allocation8 + $0x2c4] ss:$16 sps:$4 sm:$0xff]  }
  0x63   :  { %v3417_v28 = vld [vmem:[#allocation8 + $0x224] ss:$16 sps:$4 sm:$0xff]   ;;  %v3445_v49 = vld [vmem:[#allocation8 + $0x380] ss:$16 sps:$4 sm:$0xff]  }
  0x64   :  { %552 = vmatmul.mubr.bf16.vlgmr.msra.gmra.mxu0 %v3994_v12  ;;  %593 = vmatmul.mubr.bf16.vlgmr.msra.gmra.mxu1 %v3994_v12  ;;  %v3423_v32 = vld [vmem:[#allocation8 + $0x204] ss:$16 sps:$4 sm:$0xff]   ;;  %v3457_v57 = vld [vmem:[#allocation8 + $0x340] ss:$16 sps:$4 sm:$0xff]  }
  0x65   :  { %602 = vmatpush1.bf16.msra.mxu0 %v3026_v13  ;;  %643 = vmatpush1.bf16.msra.mxu1 %v3028_v14  ;;  %v3393_v13 = vld [vmem:[#allocation8 + $0x2a4] ss:$16 sps:$4 sm:$0xff]   ;;  %v3388_v14 = vld [vmem:[#allocation8 + $0xa0] ss:$16 sps:$4 sm:$0xff]  }
  0x66   :  { %603 = vmatprep.subr.bf16.mxu0 %v3019_v15  ;;  %644 = vmatprep.subr.bf16.mxu1 %v3021_v17  ;;  %v3391_v15 = vld [vmem:[#allocation8 + $0x2a0] ss:$16 sps:$4 sm:$0xff]   ;;  %v3399_v17 = vld [vmem:[#allocation8 + $0x284] ss:$16 sps:$4 sm:$0xff]  }
  0x67   :  { %633 = vmatprep.mubr.bf16.mxu0 %v3935_v0  ;;  %674 = vmatprep.mubr.bf16.mxu1 %v3935_v0  ;;  %v2997_v0 = vcombine.high %v120_v35, %v124_v36  ;;  %v3426_v35 = vld [vmem:[#allocation8 + $0x1e4] ss:$16 sps:$4 sm:$0xff]  }
  0x68   :  { %v3429_v36 = vld [vmem:[#allocation8 + $0x3e4] ss:$16 sps:$4 sm:$0xff]  }
  0x69   :  { %604 = vmatpush1.bf16.msra.mxu0 %v3018_v21  ;;  %645 = vmatpush1.bf16.msra.mxu1 %v3020_v22  ;;  %v3405_v21 = vld [vmem:[#allocation8 + $0x264] ss:$16 sps:$4 sm:$0xff]   ;;  %v3403_v22 = vld [vmem:[#allocation8 + $0x260] ss:$16 sps:$4 sm:$0xff]  }
  0x6a   :  { %605 = vmatprep.subr.bf16.mxu0 %v3011_v23  ;;  %646 = vmatprep.subr.bf16.mxu1 %v3013_v25  ;;  %v3408_v23 = vld [vmem:[#allocation8 + $0x44] ss:$16 sps:$4 sm:$0xff]   ;;  %v3406_v25 = vld [vmem:[#allocation8 + $0x40] ss:$16 sps:$4 sm:$0xff]  }
  0x6b   :  { %v3435_v40 = vld [vmem:[#allocation8 + $0x3c4] ss:$16 sps:$4 sm:$0xff]  }
  0x6c   :  { %v3438_v42 = vld [vmem:[#allocation8 + $0x1a4] ss:$16 sps:$4 sm:$0xff]  }
  0x6d   :  { %606 = vmatpush1.bf16.msra.mxu0 %v3010_v29  ;;  %647 = vmatpush1.bf16.msra.mxu1 %v3012_v30  ;;  %v3412_v29 = vld [vmem:[#allocation8 + $0x20] ss:$16 sps:$4 sm:$0xff]   ;;  %v3441_v43 = vld [vmem:[#allocation8 + $0x3a4] ss:$16 sps:$4 sm:$0xff]  }
  0x6e   :  { %607 = vmatprep.subr.bf16.mxu0 %v3003_v31  ;;  %648 = vmatprep.subr.bf16.mxu1 %v3005_v33  ;;  %v3415_v30 = vld [vmem:[#allocation8 + $0x220] ss:$16 sps:$4 sm:$0xff]   ;;  %v3420_v31 = vld [vmem:[#allocation8 + $0x4] ss:$16 sps:$4 sm:$0xff]  }
  0x6f   :  { %v3418_v33 = vld [vmem:[#allocation8] ss:$16 sps:$4 sm:$0xff]   ;;  %v3447_v47 = vld [vmem:[#allocation8 + $0x384] ss:$16 sps:$4 sm:$0xff]  }
  0x70   :  { %v3450_v50 = vld [vmem:[#allocation8 + $0x164] ss:$16 sps:$4 sm:$0xff]  }
  0x71   :  { %608 = vmatpush1.bf16.msra.mxu0 %v3002_v37  ;;  %649 = vmatpush1.bf16.msra.mxu1 %v3004_v38  ;;  %v3424_v37 = vld [vmem:[#allocation8 + $0x1e0] ss:$16 sps:$4 sm:$0xff]   ;;  %v3453_v51 = vld [vmem:[#allocation8 + $0x364] ss:$16 sps:$4 sm:$0xff]  }
  0x72   :  { %609 = vmatprep.subr.bf16.mxu0 %v2995_v39  ;;  %650 = vmatprep.subr.bf16.mxu1 %v2997_v0  ;;  %v3427_v38 = vld [vmem:[#allocation8 + $0x3e0] ss:$16 sps:$4 sm:$0xff]   ;;  %v3432_v39 = vld [vmem:[#allocation8 + $0x1c4] ss:$16 sps:$4 sm:$0xff]  }
  0x73   :  { %v3430_v0 = vld [vmem:[#allocation8 + $0x1c0] ss:$16 sps:$4 sm:$0xff]   ;;  %v3459_v55 = vld [vmem:[#allocation8 + $0x344] ss:$16 sps:$4 sm:$0xff]  }
  0x74   :  { %v3462_v58 = vld [vmem:[#allocation8 + $0x124] ss:$16 sps:$4 sm:$0xff]  }
  0x75   :  { %610 = vmatpush1.bf16.msra.mxu0 %v2994_v44  ;;  %651 = vmatpush1.bf16.msra.mxu1 %v2996_v45  ;;  %v3436_v44 = vld [vmem:[#allocation8 + $0x1a0] ss:$16 sps:$4 sm:$0xff]   ;;  %v3465_v59 = vld [vmem:[#allocation8 + $0x324] ss:$16 sps:$4 sm:$0xff]  }
  0x76   :  { %611 = vmatprep.subr.bf16.mxu0 %v2987_v46  ;;  %652 = vmatprep.subr.bf16.mxu1 %v2989_v48  ;;  %v3439_v45 = vld [vmem:[#allocation8 + $0x3a0] ss:$16 sps:$4 sm:$0xff]   ;;  %v3444_v46 = vld [vmem:[#allocation8 + $0x184] ss:$16 sps:$4 sm:$0xff]  }
  0x77   :  { %v3442_v48 = vld [vmem:[#allocation8 + $0x180] ss:$16 sps:$4 sm:$0xff]  }
  0x79   :  { %612 = vmatpush1.bf16.msra.mxu0 %v2986_v52  ;;  %653 = vmatpush1.bf16.msra.mxu1 %v2988_v53  ;;  %v3448_v52 = vld [vmem:[#allocation8 + $0x160] ss:$16 sps:$4 sm:$0xff]  }
  0x7a   :  { %613 = vmatprep.subr.bf16.mxu0 %v2979_v54  ;;  %654 = vmatprep.subr.bf16.mxu1 %v2981_v56  ;;  %v3451_v53 = vld [vmem:[#allocation8 + $0x360] ss:$16 sps:$4 sm:$0xff]   ;;  %v3456_v54 = vld [vmem:[#allocation8 + $0x144] ss:$16 sps:$4 sm:$0xff]  }
  0x7b   :  { %v3454_v56 = vld [vmem:[#allocation8 + $0x140] ss:$16 sps:$4 sm:$0xff]  }
  0x7d   :  { %614 = vmatpush1.bf16.msra.mxu0 %v2978_v60  ;;  %655 = vmatpush1.bf16.msra.mxu1 %v2980_v61  ;;  %v3460_v60 = vld [vmem:[#allocation8 + $0x120] ss:$16 sps:$4 sm:$0xff]  }
  0x7e   :  { %615 = vmatprep.subr.bf16.mxu0 %v2971_v62  ;;  %656 = vmatprep.subr.bf16.mxu1 %v2973_v63  ;;  %v3463_v61 = vld [vmem:[#allocation8 + $0x320] ss:$16 sps:$4 sm:$0xff]   ;;  %v3468_v62 = vld [vmem:[#allocation8 + $0x104] ss:$16 sps:$4 sm:$0xff]  }
  0x7f   :  { %v3471_v63 = vld [vmem:[#allocation8 + $0x304] ss:$16 sps:$4 sm:$0xff]  }
  0x81   :  { %616 = vmatpush1.bf16.msra.mxu0 %v2970_v2  ;;  %657 = vmatpush1.bf16.msra.mxu1 %v2972_v4  ;;  %v3469_v2 = vld [vmem:[#allocation8 + $0x300] ss:$16 sps:$4 sm:$0xff]   ;;  %v3477_v4 = vld [vmem:[#allocation8 + $0x6e4] ss:$16 sps:$4 sm:$0xff]  }
  0x82   :  { %2257 = vmatprep.subr.bf16.mxu0 %v3378_v1  ;;  %2298 = vmatprep.subr.bf16.mxu1 %v3381_v3  ;;  %v3466_v1 = vld [vmem:[#allocation8 + $0x100] ss:$16 sps:$4 sm:$0xff]   ;;  %v3474_v3 = vld [vmem:[#allocation8 + $0x4e4] ss:$16 sps:$4 sm:$0xff]  }
  0x84   :  { %634 = vmatmul.mubr.bf16.vlgmr.msra.gmra.mxu0 %v3994_v12  ;;  %675 = vmatmul.mubr.bf16.vlgmr.msra.gmra.mxu1 %v3994_v12  ;;  %v3400_v12 = vld [vmem:[#allocation8 + $0x60] ss:$16 sps:$4 sm:$0xff]  }
  0x85   :  { %2258 = vmatpush1.bf16.msra.mxu0 %v3376_v5  ;;  %2299 = vmatpush1.bf16.msra.mxu1 %v3379_v6  ;;  %v159_v5 = vlaneseq }
  0x86   :  { %2259 = vmatprep.subr.bf16.mxu0 %v3384_v7  ;;  %2300 = vmatprep.subr.bf16.mxu1 %v3387_v8  ;;  %v4005_v8 = vld [vmem:[#allocation7] sm:$0xff] }
  0x87   :  { %v4002_v6 = vshrl.u32 %v159_v5, 7 }
  0x89   :  { %2260 = vmatpush1.bf16.msra.mxu0 %v3382_v9  ;;  %2301 = vmatpush1.bf16.msra.mxu1 %v3385_v10  ;;  %v161_v7 = vsub.s32 0, %v4002_v6  ;;  %v169_v9 = vsub.s32 2, %v4002_v6  ;;  %v165_v10 = vsub.s32 1, %v4002_v6 }
  0x8a   :  { %2261 = vmatprep.subr.bf16.mxu0 %v3390_v11  ;;  %2302 = vmatprep.subr.bf16.mxu1 %v3393_v13  ;;  %v173_v11 = vsub.s32 3, %v4002_v6 }
  0x8b   :  { %v162_v13 = vrot.slane %v4005_v8, %v161_v7 }
  0x8d   :  { %2262 = vmatpush1.bf16.msra.mxu0 %v3388_v14  ;;  %2303 = vmatpush1.bf16.msra.mxu1 %v3391_v15  ;;  %v170_v14 = vrot.slane %v4005_v8, %v169_v9  ;;  %v166_v15 = vrot.slane %v4005_v8, %v165_v10 }
  0x8e   :  { %2263 = vmatprep.subr.bf16.mxu0 %v3396_v16  ;;  %2304 = vmatprep.subr.bf16.mxu1 %v3399_v17  ;;  %v174_v17 = vrot.slane %v4005_v8, %v173_v11 }
  0x91   :  { %2264 = vmatpush1.bf16.msra.mxu0 %v3394_v18  ;;  %2305 = vmatpush1.bf16.msra.mxu1 %v3397_v19 }
  0x92   :  { %2265 = vmatprep.subr.bf16.mxu0 %v3402_v20  ;;  %2306 = vmatprep.subr.bf16.mxu1 %v3405_v21 }
  0x95   :  { %2266 = vmatpush1.bf16.msra.mxu0 %v3400_v12  ;;  %2307 = vmatpush1.bf16.msra.mxu1 %v3403_v22 }
  0x96   :  { %2267 = vmatprep.subr.bf16.mxu0 %v3408_v23  ;;  %2308 = vmatprep.subr.bf16.mxu1 %v3411_v24 }
  0x99   :  { %2268 = vmatpush1.bf16.msra.mxu0 %v3406_v25  ;;  %2309 = vmatpush1.bf16.msra.mxu1 %v3409_v26 }
  0x9a   :  { %2269 = vmatprep.subr.bf16.mxu0 %v3414_v27  ;;  %2310 = vmatprep.subr.bf16.mxu1 %v3417_v28 }
  0x9d   :  { %2270 = vmatpush1.bf16.msra.mxu0 %v3412_v29  ;;  %2311 = vmatpush1.bf16.msra.mxu1 %v3415_v30 }
  0x9e   :  { %2271 = vmatprep.subr.bf16.mxu0 %v3420_v31  ;;  %2312 = vmatprep.subr.bf16.mxu1 %v3423_v32 }
  0xa1   :  { %2272 = vmatpush1.bf16.msra.mxu0 %v3418_v33  ;;  %2313 = vmatpush1.bf16.msra.mxu1 %v3421_v34  ;;  %v3472_v34 = vld [vmem:[#allocation8 + $0x4e0] ss:$16 sps:$4 sm:$0xff]  }
  0xa2   :  { %2273 = vmatprep.subr.bf16.mxu0 %v3426_v35  ;;  %2314 = vmatprep.subr.bf16.mxu1 %v3429_v36 }
  0xa5   :  { %2274 = vmatpush2.bf16.msra.mxu0 %v3424_v37  ;;  %2315 = vmatpush2.bf16.msra.mxu1 %v3427_v38  ;;  %v3475_v37 = vld [vmem:[#allocation8 + $0x6e0] ss:$16 sps:$4 sm:$0xff]   ;;  %v3480_v38 = vld [vmem:[#allocation8 + $0x4c4] ss:$16 sps:$4 sm:$0xff]  }
  0xa6   :  { %2275 = vmatprep.subr.bf16.mxu0 %v3432_v39  ;;  %2316 = vmatprep.subr.bf16.mxu1 %v3435_v40  ;;  %v3483_v39 = vld [vmem:[#allocation8 + $0x6c4] ss:$16 sps:$4 sm:$0xff]   ;;  %v3478_v40 = vld [vmem:[#allocation8 + $0x4c0] ss:$16 sps:$4 sm:$0xff]  }
  0xa9   :  { %2276 = vmatpush2.bf16.msra.mxu0 %v3430_v0  ;;  %2317 = vmatpush2.bf16.msra.mxu1 %v3433_v41  ;;  %v3481_v0 = vld [vmem:[#allocation8 + $0x6c0] ss:$16 sps:$4 sm:$0xff]   ;;  %v3486_v41 = vld [vmem:[#allocation8 + $0x4a4] ss:$16 sps:$4 sm:$0xff]  }
  0xaa   :  { %2277 = vmatprep.subr.bf16.mxu0 %v3438_v42  ;;  %2318 = vmatprep.subr.bf16.mxu1 %v3441_v43  ;;  %v3489_v42 = vld [vmem:[#allocation8 + $0x6a4] ss:$16 sps:$4 sm:$0xff]   ;;  %v3484_v43 = vld [vmem:[#allocation8 + $0x4a0] ss:$16 sps:$4 sm:$0xff]  }
  0xad   :  { %2278 = vmatpush2.bf16.msra.mxu0 %v3436_v44  ;;  %2319 = vmatpush2.bf16.msra.mxu1 %v3439_v45  ;;  %v3487_v44 = vld [vmem:[#allocation8 + $0x6a0] ss:$16 sps:$4 sm:$0xff]   ;;  %v3492_v45 = vld [vmem:[#allocation8 + $0x484] ss:$16 sps:$4 sm:$0xff]  }
  0xae   :  { %2279 = vmatprep.subr.bf16.mxu0 %v3444_v46  ;;  %2320 = vmatprep.subr.bf16.mxu1 %v3447_v47  ;;  %v3495_v46 = vld [vmem:[#allocation8 + $0x684] ss:$16 sps:$4 sm:$0xff]   ;;  %v3490_v47 = vld [vmem:[#allocation8 + $0x480] ss:$16 sps:$4 sm:$0xff]  }
  0xb1   :  { %2280 = vmatpush2.bf16.msra.mxu0 %v3442_v48  ;;  %2321 = vmatpush2.bf16.msra.mxu1 %v3445_v49  ;;  %v3493_v48 = vld [vmem:[#allocation8 + $0x680] ss:$16 sps:$4 sm:$0xff]   ;;  %v3498_v49 = vld [vmem:[#allocation8 + $0x464] ss:$16 sps:$4 sm:$0xff]  }
  0xb2   :  { %2281 = vmatprep.subr.bf16.mxu0 %v3450_v50  ;;  %2322 = vmatprep.subr.bf16.mxu1 %v3453_v51  ;;  %v3501_v50 = vld [vmem:[#allocation8 + $0x664] ss:$16 sps:$4 sm:$0xff]   ;;  %v3496_v51 = vld [vmem:[#allocation8 + $0x460] ss:$16 sps:$4 sm:$0xff]  }
  0xb5   :  { %2282 = vmatpush2.bf16.msra.mxu0 %v3448_v52  ;;  %2323 = vmatpush2.bf16.msra.mxu1 %v3451_v53  ;;  %v3499_v52 = vld [vmem:[#allocation8 + $0x660] ss:$16 sps:$4 sm:$0xff]   ;;  %v3504_v53 = vld [vmem:[#allocation8 + $0x444] ss:$16 sps:$4 sm:$0xff]  }
  0xb6   :  { %2283 = vmatprep.subr.bf16.mxu0 %v3456_v54  ;;  %2324 = vmatprep.subr.bf16.mxu1 %v3459_v55  ;;  %v3507_v54 = vld [vmem:[#allocation8 + $0x644] ss:$16 sps:$4 sm:$0xff]   ;;  %v3502_v55 = vld [vmem:[#allocation8 + $0x440] ss:$16 sps:$4 sm:$0xff]  }
  0xb9   :  { %2284 = vmatpush2.bf16.msra.mxu0 %v3454_v56  ;;  %2325 = vmatpush2.bf16.msra.mxu1 %v3457_v57  ;;  %v181_v56 = vsub.s32 5, %v4002_v6  ;;  %v3505_v57 = vld [vmem:[#allocation8 + $0x640] ss:$16 sps:$4 sm:$0xff]  }
  0xba   :  { %2285 = vmatprep.subr.bf16.mxu0 %v3462_v58  ;;  %2326 = vmatprep.subr.bf16.mxu1 %v3465_v59  ;;  %v3510_v58 = vld [vmem:[#allocation8 + $0x424] ss:$16 sps:$4 sm:$0xff]   ;;  %v189_v59 = vsub.s32 7, %v4002_v6 }
  0xbd   :  { %2286 = vmatpush2.bf16.msra.mxu0 %v3460_v60  ;;  %2327 = vmatpush2.bf16.msra.mxu1 %v3463_v61  ;;  %v3513_v60 = vld [vmem:[#allocation8 + $0x624] ss:$16 sps:$4 sm:$0xff]   ;;  %v3508_v61 = vld [vmem:[#allocation8 + $0x420] ss:$16 sps:$4 sm:$0xff]  }
  0xbe   :  { %2287 = vmatprep.subr.bf16.mxu0 %v3468_v62  ;;  %2328 = vmatprep.subr.bf16.mxu1 %v3471_v63  ;;  %v182_v62 = vrot.slane %v4005_v8, %v181_v56  ;;  %v3511_v63 = vld [vmem:[#allocation8 + $0x620] ss:$16 sps:$4 sm:$0xff]  }
  0xbf   :  { %v3553_v56 = vld [vmem:[#allocation8 + $0x740] ss:$16 sps:$4 sm:$0xff]  }
  0xc1   :  { %2288 = vmatpush2.bf16.msra.mxu0 %v3466_v1  ;;  %2329 = vmatpush2.bf16.msra.mxu1 %v3469_v2  ;;  %v3516_v1 = vld [vmem:[#allocation8 + $0x404] ss:$16 sps:$4 sm:$0xff]  }
  0xc2   :  { %2339 = vmatprep.subr.bf16.mxu0 %v3474_v3  ;;  %2380 = vmatprep.subr.bf16.mxu1 %v3477_v4  ;;  %v190_v3 = vrot.slane %v4005_v8, %v189_v59  ;;  %v3519_v4 = vld [vmem:[#allocation8 + $0x604] ss:$16 sps:$4 sm:$0xff]  }
 0x124   :  { %v553_v16 = vpop.f32.mrf.mxu0  ;;  %v594_v19 = vpop.f32.mrf.mxu1 }
 0x125   :  { %v554_v18 = vadd.f32 %v553_v16, %v162_v13  ;;  %v595_v20 = vadd.f32 %v594_v19, %v170_v14  ;;  %v3514_v14 = vld [vmem:[#allocation8 + $0x400] ss:$16 sps:$4 sm:$0xff]  }
 0x126   :  { %v555_v21 = vpop.f32.mrf.mxu0  ;;  %v596_v22 = vpop.f32.mrf.mxu1 }
 0x127   :  { %v556_v12 = vadd.f32 %v555_v21, %v166_v15  ;;  %v683_v23 = vmax.f32 %v554_v18, 0.0  ;;  %v685_v24 = vmax.f32 %v595_v20, 0.0  ;;  %v597_v25 = vadd.f32 %v596_v22, %v174_v17  ;;  %v3517_v17 = vld [vmem:[#allocation8 + $0x600] ss:$16 sps:$4 sm:$0xff]   ;;  %v3522_v18 = vld [vmem:[#allocation8 + $0x5e4] ss:$16 sps:$4 sm:$0xff]  }
 0x128   :  { %v557_v26 = vpop.f32.mrf.mxu0  ;;  %v598_v28 = vpop.f32.mrf.mxu1  ;;  %v3525_v21 = vld [vmem:[#allocation8 + $0x7e4] ss:$16 sps:$4 sm:$0xff]  }
 0x129   :  { %v684_v27 = vmax.f32 %v556_v12, 0.0  ;;  %v686_v29 = vmax.f32 %v597_v25, 0.0  ;;  %v4022_v31 = vpack.c.bf16 %v685_v24, %v685_v24  ;;  %v4026_v35 = vpack.c.bf16 %v683_v23, %v683_v23  ;;  %v3520_v25 = vld [vmem:[#allocation8 + $0x5e0] ss:$16 sps:$4 sm:$0xff]  }
 0x12a   :  { %v558_v30 = vpop.f32.mrf.mxu0  ;;  %v599_v33 = vpop.f32.mrf.mxu1  ;;  %v3523_v28 = vld [vmem:[#allocation8 + $0x7e0] ss:$16 sps:$4 sm:$0xff]  }
 0x12b   :  { %v4024_v32 = vpack.c.bf16 %v684_v27, %v684_v27  ;;  %v4028_v36 = vpack.c.bf16 %v686_v29, %v686_v29  ;;  %v3528_v29 = vld [vmem:[#allocation8 + $0x5c4] ss:$16 sps:$4 sm:$0xff]  }
 0x12c   :  { %v3531_v33 = vld [vmem:[#allocation8 + $0x7c4] ss:$16 sps:$4 sm:$0xff]  }
 0x12d   :  { %2289 = vmatprep.mubr.bf16.mxu0 %v4024_v32  ;;  %2330 = vmatprep.mubr.bf16.mxu1 %v4028_v36 }
 0x12e   :  { %2290 = vmatmul.mubr.bf16.vlgmr.msra.gmra.mxu0 %v4026_v35  ;;  %2331 = vmatmul.mubr.bf16.vlgmr.msra.gmra.mxu1 %v4022_v31 }
 0x12f   :  { %2340 = vmatpush1.bf16.msra.mxu0 %v3472_v34  ;;  %2381 = vmatpush1.bf16.msra.mxu1 %v3475_v37  ;;  %v3526_v34 = vld [vmem:[#allocation8 + $0x5c0] ss:$16 sps:$4 sm:$0xff]  }
 0x130   :  { %2341 = vmatprep.subr.bf16.mxu0 %v3480_v38  ;;  %2382 = vmatprep.subr.bf16.mxu1 %v3483_v39  ;;  %v3529_v37 = vld [vmem:[#allocation8 + $0x7c0] ss:$16 sps:$4 sm:$0xff]   ;;  %v3534_v38 = vld [vmem:[#allocation8 + $0x5a4] ss:$16 sps:$4 sm:$0xff]  }
 0x131   :  { %v3537_v39 = vld [vmem:[#allocation8 + $0x7a4] ss:$16 sps:$4 sm:$0xff]  }
 0x133   :  { %2342 = vmatpush1.bf16.msra.mxu0 %v3478_v40  ;;  %2383 = vmatpush1.bf16.msra.mxu1 %v3481_v0  ;;  %v3532_v40 = vld [vmem:[#allocation8 + $0x5a0] ss:$16 sps:$4 sm:$0xff]  }
 0x134   :  { %2343 = vmatprep.subr.bf16.mxu0 %v3486_v41  ;;  %2384 = vmatprep.subr.bf16.mxu1 %v3489_v42  ;;  %v3535_v0 = vld [vmem:[#allocation8 + $0x7a0] ss:$16 sps:$4 sm:$0xff]   ;;  %v3540_v41 = vld [vmem:[#allocation8 + $0x584] ss:$16 sps:$4 sm:$0xff]  }
 0x135   :  { %v3543_v42 = vld [vmem:[#allocation8 + $0x784] ss:$16 sps:$4 sm:$0xff]  }
 0x137   :  { %2344 = vmatpush1.bf16.msra.mxu0 %v3484_v43  ;;  %2385 = vmatpush1.bf16.msra.mxu1 %v3487_v44  ;;  %v3538_v43 = vld [vmem:[#allocation8 + $0x580] ss:$16 sps:$4 sm:$0xff]  }
 0x138   :  { %2345 = vmatprep.subr.bf16.mxu0 %v3492_v45  ;;  %2386 = vmatprep.subr.bf16.mxu1 %v3495_v46  ;;  %v3541_v44 = vld [vmem:[#allocation8 + $0x780] ss:$16 sps:$4 sm:$0xff]   ;;  %v3546_v45 = vld [vmem:[#allocation8 + $0x564] ss:$16 sps:$4 sm:$0xff]  }
 0x139   :  { %v3549_v46 = vld [vmem:[#allocation8 + $0x764] ss:$16 sps:$4 sm:$0xff]  }
 0x13b   :  { %2346 = vmatpush1.bf16.msra.mxu0 %v3490_v47  ;;  %2387 = vmatpush1.bf16.msra.mxu1 %v3493_v48  ;;  %v3544_v47 = vld [vmem:[#allocation8 + $0x560] ss:$16 sps:$4 sm:$0xff]   ;;  %v185_v48 = vsub.s32 6, %v4002_v6 }
 0x13c   :  { %2347 = vmatprep.subr.bf16.mxu0 %v3498_v49  ;;  %2388 = vmatprep.subr.bf16.mxu1 %v3501_v50  ;;  %v3547_v49 = vld [vmem:[#allocation8 + $0x760] ss:$16 sps:$4 sm:$0xff]   ;;  %v177_v50 = vsub.s32 4, %v4002_v6 }
 0x13f   :  { %2348 = vmatpush1.bf16.msra.mxu0 %v3496_v51  ;;  %2389 = vmatpush1.bf16.msra.mxu1 %v3499_v52  ;;  %v3552_v51 = vld [vmem:[#allocation8 + $0x544] ss:$16 sps:$4 sm:$0xff]  }
 0x140   :  { %2349 = vmatprep.subr.bf16.mxu0 %v3504_v53  ;;  %2390 = vmatprep.subr.bf16.mxu1 %v3507_v54  ;;  %v3555_v52 = vld [vmem:[#allocation8 + $0x744] ss:$16 sps:$4 sm:$0xff]   ;;  %v186_v53 = vrot.slane %v4005_v8, %v185_v48  ;;  %v3550_v54 = vld [vmem:[#allocation8 + $0x540] ss:$16 sps:$4 sm:$0xff]   ;;  %v3618_v48 = vld [vmem:[#allocation8 + $0x1ec] ss:$16 sps:$4 sm:$0xff]  }
 0x143   :  { %2350 = vmatpush1.bf16.msra.mxu0 %v3502_v55  ;;  %2391 = vmatpush1.bf16.msra.mxu1 %v3505_v57  ;;  %v178_v55 = vrot.slane %v4005_v8, %v177_v50  ;;  %v3558_v57 = vld [vmem:[#allocation8 + $0x524] ss:$16 sps:$4 sm:$0xff]   ;;  %v3562_v8 = vld [vmem:[#allocation8 + $0x500] ss:$16 sps:$4 sm:$0xff]   ;;  %v3616_v50 = vld [vmem:[#allocation8 + $0x1e8] ss:$16 sps:$4 sm:$0xff]  }
 0x144   :  { %2351 = vmatprep.subr.bf16.mxu0 %v3510_v58  ;;  %v4037_v2 = vpop.f32.mrf.mxu0  ;;  %2392 = vmatprep.subr.bf16.mxu1 %v3513_v60  ;;  %v4040_v5 = vpop.f32.mrf.mxu1  ;;  %v3561_v58 = vld [vmem:[#allocation8 + $0x724] ss:$16 sps:$4 sm:$0xff]   ;;  %v3556_v60 = vld [vmem:[#allocation8 + $0x520] ss:$16 sps:$4 sm:$0xff]  }
 0x145   :  { %v677_v59 = vadd.f32 %v4040_v5, %v186_v53  ;;  %v3573_v5 = vld [vmem:[#allocation8 + $0x2ec] ss:$16 sps:$4 sm:$0xff]  }
 0x146   :  { %v637_v13 = vpop.f32.mrf.mxu0  ;;  %v678_v16 = vpop.f32.mrf.mxu1  ;;  %v3627_v53 = vld [vmem:[#allocation8 + $0x3cc] ss:$16 sps:$4 sm:$0xff]  }
 0x147   :  { %2352 = vmatpush1.bf16.msra.mxu0 %v3508_v61  ;;  %v638_v15 = vadd.f32 %v637_v13, %v182_v62  ;;  %2393 = vmatpush1.bf16.msra.mxu1 %v3511_v63  ;;  %v679_v20 = vadd.f32 %v678_v16, %v190_v3  ;;  %v636_v61 = vadd.f32 %v4037_v2, %v178_v55  ;;  %v3559_v62 = vld [vmem:[#allocation8 + $0x720] ss:$16 sps:$4 sm:$0xff]   ;;  %v3564_v63 = vld [vmem:[#allocation8 + $0x504] ss:$16 sps:$4 sm:$0xff]   ;;  %v689_v3 = vmax.f32 %v677_v59, 0.0 }
 0x148   :  { %2353 = vmatprep.subr.bf16.mxu0 %v3516_v1  ;;  %v639_v19 = vpop.f32.mrf.mxu0  ;;  %2394 = vmatprep.subr.bf16.mxu1 %v3519_v4  ;;  %v680_v22 = vpop.f32.mrf.mxu1  ;;  %v3567_v1 = vld [vmem:[#allocation8 + $0x704] ss:$16 sps:$4 sm:$0xff]   ;;  %v3565_v13 = vld [vmem:[#allocation8 + $0x700] ss:$16 sps:$4 sm:$0xff]   ;;  %v3568_v2 = vld [vmem:[#allocation8 + $0xe8] ss:$16 sps:$4 sm:$0xff]  }
 0x149   :  { %v688_v12 = vmax.f32 %v638_v15, 0.0  ;;  %v690_v23 = vmax.f32 %v679_v20, 0.0  ;;  %v687_v4 = vmax.f32 %v636_v61, 0.0  ;;  %v4054_v15 = vpack.c.bf16 %v689_v3, %v689_v3  ;;  %v3579_v19 = vld [vmem:[#allocation8 + $0x2cc] ss:$16 sps:$4 sm:$0xff]  }
 0x14a   :  { %v640_v24 = vpop.f32.mrf.mxu0  ;;  %v681_v27 = vpop.f32.mrf.mxu1  ;;  %v3574_v20 = vld [vmem:[#allocation8 + $0xc8] ss:$16 sps:$4 sm:$0xff]   ;;  %v3585_v22 = vld [vmem:[#allocation8 + $0x2ac] ss:$16 sps:$4 sm:$0xff]  }
 0x14b   :  { %2354 = vmatpush1.bf16.msra.mxu0 %v3514_v14  ;;  %v4042_v26 = vpack.c.bf16 %v688_v12, %v688_v12  ;;  %2395 = vmatpush1.bf16.msra.mxu1 %v3517_v17  ;;  %v4044_v30 = vpack.c.bf16 %v690_v23, %v690_v23  ;;  %v3570_v14 = vld [vmem:[#allocation8 + $0xec] ss:$16 sps:$4 sm:$0xff]   ;;  %v4056_v16 = vpack.c.bf16 %v687_v4, %v687_v4  ;;  %v3571_v17 = vld [vmem:[#allocation8 + $0x2e8] ss:$16 sps:$4 sm:$0xff]  }
 0x14c   :  { %2355 = vmatprep.subr.bf16.mxu0 %v3522_v18  ;;  %2396 = vmatprep.subr.bf16.mxu1 %v3525_v21  ;;  %v3576_v18 = vld [vmem:[#allocation8 + $0xcc] ss:$16 sps:$4 sm:$0xff]   ;;  %v3577_v21 = vld [vmem:[#allocation8 + $0x2c8] ss:$16 sps:$4 sm:$0xff]  }
 0x14d   :  { %2371 = vmatprep.mubr.bf16.mxu0 %v4042_v26  ;;  %2412 = vmatprep.mubr.bf16.mxu1 %v4044_v30  ;;  %v3582_v12 = vld [vmem:[#allocation8 + $0xac] ss:$16 sps:$4 sm:$0xff]   ;;  %v3580_v23 = vld [vmem:[#allocation8 + $0xa8] ss:$16 sps:$4 sm:$0xff]  }
 0x14e   :  { %v3583_v24 = vld [vmem:[#allocation8 + $0x2a8] ss:$16 sps:$4 sm:$0xff]   ;;  %v3591_v27 = vld [vmem:[#allocation8 + $0x28c] ss:$16 sps:$4 sm:$0xff]  }
 0x14f   :  { %2356 = vmatpush2.bf16.msra.mxu0 %v3520_v25  ;;  %2397 = vmatpush2.bf16.msra.mxu1 %v3523_v28  ;;  %v3588_v25 = vld [vmem:[#allocation8 + $0x8c] ss:$16 sps:$4 sm:$0xff]   ;;  %v3586_v28 = vld [vmem:[#allocation8 + $0x88] ss:$16 sps:$4 sm:$0xff]  }
 0x150   :  { %2357 = vmatprep.subr.bf16.mxu0 %v3528_v29  ;;  %2398 = vmatprep.subr.bf16.mxu1 %v3531_v33  ;;  %v3594_v29 = vld [vmem:[#allocation8 + $0x6c] ss:$16 sps:$4 sm:$0xff]   ;;  %v3625_v55 = vld [vmem:[#allocation8 + $0x3c8] ss:$16 sps:$4 sm:$0xff]  }
 0x151   :  { %v3597_v33 = vld [vmem:[#allocation8 + $0x26c] ss:$16 sps:$4 sm:$0xff]   ;;  %v3631_v59 = vld [vmem:[#allocation8 + $0x3a8] ss:$16 sps:$4 sm:$0xff]  }
 0x152   :  { %v3639_v61 = vld [vmem:[#allocation8 + $0x38c] ss:$16 sps:$4 sm:$0xff]   ;;  %v3643_v4 = vld [vmem:[#allocation8 + $0x368] ss:$16 sps:$4 sm:$0xff]  }
 0x153   :  { %2358 = vmatpush2.bf16.msra.mxu0 %v3526_v34  ;;  %2399 = vmatpush2.bf16.msra.mxu1 %v3529_v37  ;;  %v3595_v34 = vld [vmem:[#allocation8 + $0x268] ss:$16 sps:$4 sm:$0xff]   ;;  %v3600_v37 = vld [vmem:[#allocation8 + $0x4c] ss:$16 sps:$4 sm:$0xff]  }
 0x154   :  { %2359 = vmatprep.subr.bf16.mxu0 %v3534_v38  ;;  %2400 = vmatprep.subr.bf16.mxu1 %v3537_v39  ;;  %v3603_v38 = vld [vmem:[#allocation8 + $0x24c] ss:$16 sps:$4 sm:$0xff]   ;;  %v3598_v39 = vld [vmem:[#allocation8 + $0x48] ss:$16 sps:$4 sm:$0xff]  }
 0x155   :  { %v3645_v3 = vld [vmem:[#allocation8 + $0x36c] ss:$16 sps:$4 sm:$0xff]  }
 0x157   :  { %2360 = vmatpush2.bf16.msra.mxu0 %v3532_v40  ;;  %2401 = vmatpush2.bf16.msra.mxu1 %v3535_v0  ;;  %v3601_v40 = vld [vmem:[#allocation8 + $0x248] ss:$16 sps:$4 sm:$0xff]   ;;  %v3606_v0 = vld [vmem:[#allocation8 + $0x2c] ss:$16 sps:$4 sm:$0xff]  }
 0x158   :  { %2361 = vmatprep.subr.bf16.mxu0 %v3540_v41  ;;  %2402 = vmatprep.subr.bf16.mxu1 %v3543_v42  ;;  %v3609_v41 = vld [vmem:[#allocation8 + $0x22c] ss:$16 sps:$4 sm:$0xff]   ;;  %v3604_v42 = vld [vmem:[#allocation8 + $0x28] ss:$16 sps:$4 sm:$0xff]  }
 0x15b   :  { %2362 = vmatpush2.bf16.msra.mxu0 %v3538_v43  ;;  %2403 = vmatpush2.bf16.msra.mxu1 %v3541_v44  ;;  %v3607_v43 = vld [vmem:[#allocation8 + $0x228] ss:$16 sps:$4 sm:$0xff]   ;;  %v3612_v44 = vld [vmem:[#allocation8 + $0xc] ss:$16 sps:$4 sm:$0xff]  }
 0x15c   :  { %2363 = vmatprep.subr.bf16.mxu0 %v3546_v45  ;;  %2404 = vmatprep.subr.bf16.mxu1 %v3549_v46  ;;  %v3615_v45 = vld [vmem:[#allocation8 + $0x20c] ss:$16 sps:$4 sm:$0xff]   ;;  %v3610_v46 = vld [vmem:[#allocation8 + $0x8] ss:$16 sps:$4 sm:$0xff]  }
 0x15f   :  { %2364 = vmatpush2.bf16.msra.mxu0 %v3544_v47  ;;  %2405 = vmatpush2.bf16.msra.mxu1 %v3547_v49  ;;  %v3613_v47 = vld [vmem:[#allocation8 + $0x208] ss:$16 sps:$4 sm:$0xff]   ;;  %v3621_v49 = vld [vmem:[#allocation8 + $0x3ec] ss:$16 sps:$4 sm:$0xff]  }
 0x160   :  { %2365 = vmatprep.subr.bf16.mxu0 %v3552_v51  ;;  %2406 = vmatprep.subr.bf16.mxu1 %v3555_v52  ;;  %v3619_v51 = vld [vmem:[#allocation8 + $0x3e8] ss:$16 sps:$4 sm:$0xff]   ;;  %v3624_v52 = vld [vmem:[#allocation8 + $0x1cc] ss:$16 sps:$4 sm:$0xff]  }
 0x163   :  { %2366 = vmatpush2.bf16.msra.mxu0 %v3550_v54  ;;  %2407 = vmatpush2.bf16.msra.mxu1 %v3553_v56  ;;  %v3622_v54 = vld [vmem:[#allocation8 + $0x1c8] ss:$16 sps:$4 sm:$0xff]   ;;  %v3630_v56 = vld [vmem:[#allocation8 + $0x1ac] ss:$16 sps:$4 sm:$0xff]  }
 0x164   :  { %2367 = vmatprep.subr.bf16.mxu0 %v3558_v57  ;;  %2408 = vmatprep.subr.bf16.mxu1 %v3561_v58  ;;  %v3633_v57 = vld [vmem:[#allocation8 + $0x3ac] ss:$16 sps:$4 sm:$0xff]   ;;  %v3628_v58 = vld [vmem:[#allocation8 + $0x1a8] ss:$16 sps:$4 sm:$0xff]  }
 0x167   :  { %2368 = vmatpush2.bf16.msra.mxu0 %v3556_v60  ;;  %2409 = vmatpush2.bf16.msra.mxu1 %v3559_v62  ;;  %v3636_v60 = vld [vmem:[#allocation8 + $0x18c] ss:$16 sps:$4 sm:$0xff]   ;;  %v3634_v62 = vld [vmem:[#allocation8 + $0x188] ss:$16 sps:$4 sm:$0xff]  }
 0x168   :  { %2369 = vmatprep.subr.bf16.mxu0 %v3564_v63  ;;  %2410 = vmatprep.subr.bf16.mxu1 %v3567_v1  ;;  %v3637_v63 = vld [vmem:[#allocation8 + $0x388] ss:$16 sps:$4 sm:$0xff]   ;;  %v3642_v1 = vld [vmem:[#allocation8 + $0x16c] ss:$16 sps:$4 sm:$0xff]  }
 0x16b   :  { %2370 = vmatpush2.bf16.msra.mxu0 %v3562_v8  ;;  %2411 = vmatpush2.bf16.msra.mxu1 %v3565_v13  ;;  %v3640_v8 = vld [vmem:[#allocation8 + $0x168] ss:$16 sps:$4 sm:$0xff]   ;;  %v3648_v13 = vld [vmem:[#allocation8 + $0x14c] ss:$16 sps:$4 sm:$0xff]  }
 0x16c   :  { %2421 = vmatprep.subr.bf16.mxu0 %v3570_v14  ;;  %2462 = vmatprep.subr.bf16.mxu1 %v3573_v5  ;;  %v3651_v14 = vld [vmem:[#allocation8 + $0x34c] ss:$16 sps:$4 sm:$0xff]   ;;  %v3646_v5 = vld [vmem:[#allocation8 + $0x148] ss:$16 sps:$4 sm:$0xff]  }
 0x16e   :  { %2372 = vmatmul.mubr.bf16.vlgmr.msra.gmra.mxu0 %v4056_v16  ;;  %2413 = vmatmul.mubr.bf16.vlgmr.msra.gmra.mxu1 %v4054_v15 }
 0x16f   :  { %2422 = vmatpush1.bf16.msra.mxu0 %v3568_v2  ;;  %2453 = vmatprep.mubr.bf16.mxu0 %v4024_v32  ;;  %v3589_v32 = vld [vmem:[#allocation8 + $0x288] ss:$16 sps:$4 sm:$0xff]  }
 0x170   :  { %2463 = vmatpush1.bf16.msra.mxu1 %v3571_v17  ;;  %2494 = vmatprep.mubr.bf16.mxu1 %v4028_v36  ;;  %v3592_v36 = vld [vmem:[#allocation8 + $0x68] ss:$16 sps:$4 sm:$0xff]   ;;  %v3654_v17 = vld [vmem:[#allocation8 + $0x12c] ss:$16 sps:$4 sm:$0xff]  }
 0x171   :  { %2423 = vmatprep.subr.bf16.mxu0 %v3576_v18  ;;  %2464 = vmatprep.subr.bf16.mxu1 %v3579_v19  ;;  %v3649_v2 = vld [vmem:[#allocation8 + $0x348] ss:$16 sps:$4 sm:$0xff]   ;;  %v3657_v18 = vld [vmem:[#allocation8 + $0x32c] ss:$16 sps:$4 sm:$0xff]  }
 0x172   :  { %v3652_v19 = vld [vmem:[#allocation8 + $0x128] ss:$16 sps:$4 sm:$0xff]  }
 0x173   :  { %2424 = vmatpush1.bf16.msra.mxu0 %v3574_v20  ;;  %v3655_v20 = vld [vmem:[#allocation8 + $0x328] ss:$16 sps:$4 sm:$0xff]  }
 0x174   :  { %2465 = vmatpush1.bf16.msra.mxu1 %v3577_v21  ;;  %2425 = vmatprep.subr.bf16.mxu0 %v3582_v12  ;;  %v3660_v21 = vld [vmem:[#allocation8 + $0x10c] ss:$16 sps:$4 sm:$0xff]  }
 0x175   :  { %2466 = vmatprep.subr.bf16.mxu1 %v3585_v22  ;;  %v3663_v12 = vld [vmem:[#allocation8 + $0x30c] ss:$16 sps:$4 sm:$0xff]   ;;  %v3658_v22 = vld [vmem:[#allocation8 + $0x108] ss:$16 sps:$4 sm:$0xff]  }
 0x177   :  { %2426 = vmatpush1.bf16.msra.mxu0 %v3580_v23  ;;  %v3661_v23 = vld [vmem:[#allocation8 + $0x308] ss:$16 sps:$4 sm:$0xff]  }
 0x178   :  { %2467 = vmatpush1.bf16.msra.mxu1 %v3583_v24  ;;  %2427 = vmatprep.subr.bf16.mxu0 %v3588_v25  ;;  %v3666_v24 = vld [vmem:[#allocation8 + $0x4ec] ss:$16 sps:$4 sm:$0xff]  }
 0x179   :  { %2468 = vmatprep.subr.bf16.mxu1 %v3591_v27  ;;  %v3669_v25 = vld [vmem:[#allocation8 + $0x6ec] ss:$16 sps:$4 sm:$0xff]   ;;  %v3664_v27 = vld [vmem:[#allocation8 + $0x4e8] ss:$16 sps:$4 sm:$0xff]  }
 0x17b   :  { %2428 = vmatpush1.bf16.msra.mxu0 %v3586_v28  ;;  %v3667_v28 = vld [vmem:[#allocation8 + $0x6e8] ss:$16 sps:$4 sm:$0xff]  }
 0x17c   :  { %2469 = vmatpush1.bf16.msra.mxu1 %v3589_v32  ;;  %2429 = vmatprep.subr.bf16.mxu0 %v3594_v29  ;;  %v3672_v32 = vld [vmem:[#allocation8 + $0x4cc] ss:$16 sps:$4 sm:$0xff]  }
 0x17d   :  { %2470 = vmatprep.subr.bf16.mxu1 %v3597_v33  ;;  %v3675_v29 = vld [vmem:[#allocation8 + $0x6cc] ss:$16 sps:$4 sm:$0xff]   ;;  %v3670_v33 = vld [vmem:[#allocation8 + $0x4c8] ss:$16 sps:$4 sm:$0xff]  }
 0x17f   :  { %2430 = vmatpush1.bf16.msra.mxu0 %v3592_v36  ;;  %v3673_v36 = vld [vmem:[#allocation8 + $0x6c8] ss:$16 sps:$4 sm:$0xff]  }
 0x180   :  { %2471 = vmatpush1.bf16.msra.mxu1 %v3595_v34  ;;  %2431 = vmatprep.subr.bf16.mxu0 %v3600_v37  ;;  %v3678_v34 = vld [vmem:[#allocation8 + $0x4ac] ss:$16 sps:$4 sm:$0xff]  }
 0x181   :  { %2472 = vmatprep.subr.bf16.mxu1 %v3603_v38  ;;  %v3681_v37 = vld [vmem:[#allocation8 + $0x6ac] ss:$16 sps:$4 sm:$0xff]   ;;  %v3676_v38 = vld [vmem:[#allocation8 + $0x4a8] ss:$16 sps:$4 sm:$0xff]  }
 0x183   :  { %2432 = vmatpush1.bf16.msra.mxu0 %v3598_v39  ;;  %v3684_v39 = vld [vmem:[#allocation8 + $0x48c] ss:$16 sps:$4 sm:$0xff]  }
 0x184   :  { %2473 = vmatpush1.bf16.msra.mxu1 %v3601_v40  ;;  %2433 = vmatprep.subr.bf16.mxu0 %v3606_v0  ;;  %v3682_v40 = vld [vmem:[#allocation8 + $0x488] ss:$16 sps:$4 sm:$0xff]   ;;  %v3690_v0 = vld [vmem:[#allocation8 + $0x46c] ss:$16 sps:$4 sm:$0xff]  }
 0x185   :  { %2474 = vmatprep.subr.bf16.mxu1 %v3609_v41  ;;  %v3693_v41 = vld [vmem:[#allocation8 + $0x66c] ss:$16 sps:$4 sm:$0xff]  }
 0x187   :  { %2434 = vmatpush1.bf16.msra.mxu0 %v3604_v42  ;;  %v3691_v42 = vld [vmem:[#allocation8 + $0x668] ss:$16 sps:$4 sm:$0xff]  }
 0x188   :  { %2475 = vmatpush1.bf16.msra.mxu1 %v3607_v43  ;;  %2435 = vmatprep.subr.bf16.mxu0 %v3612_v44  ;;  %v3696_v43 = vld [vmem:[#allocation8 + $0x44c] ss:$16 sps:$4 sm:$0xff]  }
 0x189   :  { %2476 = vmatprep.subr.bf16.mxu1 %v3615_v45  ;;  %v3699_v44 = vld [vmem:[#allocation8 + $0x64c] ss:$16 sps:$4 sm:$0xff]   ;;  %v3694_v45 = vld [vmem:[#allocation8 + $0x448] ss:$16 sps:$4 sm:$0xff]  }
 0x18b   :  { %2436 = vmatpush1.bf16.msra.mxu0 %v3610_v46  ;;  %v3697_v46 = vld [vmem:[#allocation8 + $0x648] ss:$16 sps:$4 sm:$0xff]  }
 0x18c   :  { %2477 = vmatpush1.bf16.msra.mxu1 %v3613_v47  ;;  %2437 = vmatprep.subr.bf16.mxu0 %v3618_v48  ;;  %v3702_v47 = vld [vmem:[#allocation8 + $0x42c] ss:$16 sps:$4 sm:$0xff]  }
 0x18d   :  { %2478 = vmatprep.subr.bf16.mxu1 %v3621_v49  ;;  %v3705_v48 = vld [vmem:[#allocation8 + $0x62c] ss:$16 sps:$4 sm:$0xff]   ;;  %v3700_v49 = vld [vmem:[#allocation8 + $0x428] ss:$16 sps:$4 sm:$0xff]  }
 0x18f   :  { %2438 = vmatpush2.bf16.msra.mxu0 %v3616_v50  ;;  %v3703_v50 = vld [vmem:[#allocation8 + $0x628] ss:$16 sps:$4 sm:$0xff]  }
 0x190   :  { %2479 = vmatpush2.bf16.msra.mxu1 %v3619_v51  ;;  %2439 = vmatprep.subr.bf16.mxu0 %v3624_v52  ;;  %v3708_v51 = vld [vmem:[#allocation8 + $0x40c] ss:$16 sps:$4 sm:$0xff]  }
 0x191   :  { %2480 = vmatprep.subr.bf16.mxu1 %v3627_v53  ;;  %v3711_v52 = vld [vmem:[#allocation8 + $0x60c] ss:$16 sps:$4 sm:$0xff]   ;;  %v3706_v53 = vld [vmem:[#allocation8 + $0x408] ss:$16 sps:$4 sm:$0xff]  }
 0x193   :  { %2440 = vmatpush2.bf16.msra.mxu0 %v3622_v54  ;;  %v3709_v54 = vld [vmem:[#allocation8 + $0x608] ss:$16 sps:$4 sm:$0xff]  }
 0x194   :  { %2481 = vmatpush2.bf16.msra.mxu1 %v3625_v55  ;;  %2441 = vmatprep.subr.bf16.mxu0 %v3630_v56  ;;  %v3714_v55 = vld [vmem:[#allocation8 + $0x5ec] ss:$16 sps:$4 sm:$0xff]  }
 0x195   :  { %2482 = vmatprep.subr.bf16.mxu1 %v3633_v57  ;;  %v3717_v56 = vld [vmem:[#allocation8 + $0x7ec] ss:$16 sps:$4 sm:$0xff]   ;;  %v3712_v57 = vld [vmem:[#allocation8 + $0x5e8] ss:$16 sps:$4 sm:$0xff]  }
 0x197   :  { %2442 = vmatpush2.bf16.msra.mxu0 %v3628_v58  ;;  %v3715_v58 = vld [vmem:[#allocation8 + $0x7e8] ss:$16 sps:$4 sm:$0xff]  }
 0x198   :  { %2483 = vmatpush2.bf16.msra.mxu1 %v3631_v59  ;;  %2443 = vmatprep.subr.bf16.mxu0 %v3636_v60  ;;  %v3720_v59 = vld [vmem:[#allocation8 + $0x5cc] ss:$16 sps:$4 sm:$0xff]  }
 0x199   :  { %2484 = vmatprep.subr.bf16.mxu1 %v3639_v61  ;;  %v3723_v60 = vld [vmem:[#allocation8 + $0x7cc] ss:$16 sps:$4 sm:$0xff]   ;;  %v3718_v61 = vld [vmem:[#allocation8 + $0x5c8] ss:$16 sps:$4 sm:$0xff]  }
 0x19b   :  { %2444 = vmatpush2.bf16.msra.mxu0 %v3634_v62  ;;  %v3721_v62 = vld [vmem:[#allocation8 + $0x7c8] ss:$16 sps:$4 sm:$0xff]  }
 0x19c   :  { %2485 = vmatpush2.bf16.msra.mxu1 %v3637_v63  ;;  %2445 = vmatprep.subr.bf16.mxu0 %v3642_v1  ;;  %v3726_v63 = vld [vmem:[#allocation8 + $0x5ac] ss:$16 sps:$4 sm:$0xff]  }
 0x19d   :  { %2486 = vmatprep.subr.bf16.mxu1 %v3645_v3  ;;  %v3729_v1 = vld [vmem:[#allocation8 + $0x7ac] ss:$16 sps:$4 sm:$0xff]   ;;  %v3724_v3 = vld [vmem:[#allocation8 + $0x5a8] ss:$16 sps:$4 sm:$0xff]  }
 0x19f   :  { %2446 = vmatpush2.bf16.msra.mxu0 %v3640_v8  ;;  %v3727_v8 = vld [vmem:[#allocation8 + $0x7a8] ss:$16 sps:$4 sm:$0xff]  }
 0x1a0   :  { %2487 = vmatpush2.bf16.msra.mxu1 %v3643_v4  ;;  %2447 = vmatprep.subr.bf16.mxu0 %v3648_v13  ;;  %v3732_v4 = vld [vmem:[#allocation8 + $0x58c] ss:$16 sps:$4 sm:$0xff]  }
 0x1a1   :  { %2488 = vmatprep.subr.bf16.mxu1 %v3651_v14  ;;  %v3735_v13 = vld [vmem:[#allocation8 + $0x78c] ss:$16 sps:$4 sm:$0xff]   ;;  %v3730_v14 = vld [vmem:[#allocation8 + $0x588] ss:$16 sps:$4 sm:$0xff]  }
 0x1a3   :  { %2448 = vmatpush2.bf16.msra.mxu0 %v3646_v5  ;;  %v3733_v5 = vld [vmem:[#allocation8 + $0x788] ss:$16 sps:$4 sm:$0xff]  }
 0x1a4   :  { %2489 = vmatpush2.bf16.msra.mxu1 %v3649_v2  ;;  %2449 = vmatprep.subr.bf16.mxu0 %v3654_v17  ;;  %v3738_v2 = vld [vmem:[#allocation8 + $0x56c] ss:$16 sps:$4 sm:$0xff]  }
 0x1a5   :  { %2490 = vmatprep.subr.bf16.mxu1 %v3657_v18  ;;  %v3741_v17 = vld [vmem:[#allocation8 + $0x76c] ss:$16 sps:$4 sm:$0xff]   ;;  %v3736_v18 = vld [vmem:[#allocation8 + $0x568] ss:$16 sps:$4 sm:$0xff]  }
 0x1a7   :  { %2450 = vmatpush2.bf16.msra.mxu0 %v3652_v19  ;;  %v3739_v19 = vld [vmem:[#allocation8 + $0x768] ss:$16 sps:$4 sm:$0xff]  }
 0x1a8   :  { %2491 = vmatpush2.bf16.msra.mxu1 %v3655_v20  ;;  %2451 = vmatprep.subr.bf16.mxu0 %v3660_v21  ;;  %v3744_v20 = vld [vmem:[#allocation8 + $0x54c] ss:$16 sps:$4 sm:$0xff]  }
 0x1a9   :  { %2492 = vmatprep.subr.bf16.mxu1 %v3663_v12  ;;  %v3747_v21 = vld [vmem:[#allocation8 + $0x74c] ss:$16 sps:$4 sm:$0xff]   ;;  %v3742_v12 = vld [vmem:[#allocation8 + $0x548] ss:$16 sps:$4 sm:$0xff]  }
 0x1ab   :  { %2452 = vmatpush2.bf16.msra.mxu0 %v3658_v22  ;;  %v3745_v22 = vld [vmem:[#allocation8 + $0x748] ss:$16 sps:$4 sm:$0xff]  }
 0x1ac   :  { %2493 = vmatpush2.bf16.msra.mxu1 %v3661_v23  ;;  %2503 = vmatprep.subr.bf16.mxu0 %v3666_v24  ;;  %v3750_v23 = vld [vmem:[#allocation8 + $0x52c] ss:$16 sps:$4 sm:$0xff]  }
 0x1ad   :  { %2544 = vmatprep.subr.bf16.mxu1 %v3669_v25  ;;  %v3753_v24 = vld [vmem:[#allocation8 + $0x72c] ss:$16 sps:$4 sm:$0xff]   ;;  %v3748_v25 = vld [vmem:[#allocation8 + $0x528] ss:$16 sps:$4 sm:$0xff]  }
 0x1ae   :  { %2454 = vmatmul.mubr.bf16.vlgmr.msra.gmra.mxu0 %v4026_v35  ;;  %v3679_v35 = vld [vmem:[#allocation8 + $0x6a8] ss:$16 sps:$4 sm:$0xff]  }
 0x1af   :  { %2495 = vmatmul.mubr.bf16.vlgmr.msra.gmra.mxu1 %v4022_v31  ;;  %2504 = vmatpush1.bf16.msra.mxu0 %v3664_v27  ;;  %v3687_v31 = vld [vmem:[#allocation8 + $0x68c] ss:$16 sps:$4 sm:$0xff]   ;;  %v3751_v27 = vld [vmem:[#allocation8 + $0x728] ss:$16 sps:$4 sm:$0xff]  }
 0x1b0   :  { %2535 = vmatprep.mubr.bf16.mxu0 %v4042_v26  ;;  %2545 = vmatpush1.bf16.msra.mxu1 %v3667_v28  ;;  %v3685_v26 = vld [vmem:[#allocation8 + $0x688] ss:$16 sps:$4 sm:$0xff]   ;;  %v3756_v28 = vld [vmem:[#allocation8 + $0x50c] ss:$16 sps:$4 sm:$0xff]  }
 0x1b1   :  { %2576 = vmatprep.mubr.bf16.mxu1 %v4044_v30  ;;  %2505 = vmatprep.subr.bf16.mxu0 %v3672_v32  ;;  %v3688_v30 = vld [vmem:[#allocation8 + $0x468] ss:$16 sps:$4 sm:$0xff]   ;;  %v3759_v32 = vld [vmem:[#allocation8 + $0x70c] ss:$16 sps:$4 sm:$0xff]  }
 0x1b2   :  { %2546 = vmatprep.subr.bf16.mxu1 %v3675_v29  ;;  %v3754_v29 = vld [vmem:[#allocation8 + $0x508] ss:$16 sps:$4 sm:$0xff]  }
 0x1b3   :  { %2506 = vmatpush1.bf16.msra.mxu0 %v3670_v33  ;;  %v3757_v33 = vld [vmem:[#allocation8 + $0x708] ss:$16 sps:$4 sm:$0xff]  }
 0x1b4   :  { %2547 = vmatpush1.bf16.msra.mxu1 %v3673_v36  ;;  %2507 = vmatprep.subr.bf16.mxu0 %v3678_v34  ;;  %v3760_v36 = vld [vmem:[#allocation10 + $0x78] sm:$0xff]  }
 0x1b5   :  { %2548 = vmatprep.subr.bf16.mxu1 %v3681_v37  ;;  %v3761_v34 = vld [vmem:[#allocation10 + $0x38] sm:$0xff]   ;;  %v3762_v37 = vld [vmem:[#allocation10 + $0x70] sm:$0xff]  }
 0x1b7   :  { %2508 = vmatpush1.bf16.msra.mxu0 %v3676_v38 }
 0x1b8   :  { %2549 = vmatpush1.bf16.msra.mxu1 %v3679_v35  ;;  %2509 = vmatprep.subr.bf16.mxu0 %v3684_v39  ;;  %v3763_v39 = vld [vmem:[#allocation10 + $0x30] sm:$0xff]  }
 0x1b9   :  { %2550 = vmatprep.subr.bf16.mxu1 %v3687_v31 }
 0x1bb   :  { %2510 = vmatpush1.bf16.msra.mxu0 %v3682_v40  ;;  %v3764_v40 = vld [vmem:[#allocation10 + $0x68] sm:$0xff]  }
 0x1bc   :  { %2551 = vmatpush1.bf16.msra.mxu1 %v3685_v26  ;;  %2511 = vmatprep.subr.bf16.mxu0 %v3690_v0 }
 0x1bd   :  { %2552 = vmatprep.subr.bf16.mxu1 %v3693_v41 }
 0x1bf   :  { %2512 = vmatpush1.bf16.msra.mxu0 %v3688_v30  ;;  %v3765_v30 = vld [vmem:[#allocation10 + $0x28] sm:$0xff]  }
 0x1c0   :  { %2553 = vmatpush1.bf16.msra.mxu1 %v3691_v42  ;;  %2513 = vmatprep.subr.bf16.mxu0 %v3696_v43  ;;  %v3766_v43 = vld [vmem:[#allocation10 + $0x60] sm:$0xff]  }
 0x1c1   :  { %2554 = vmatprep.subr.bf16.mxu1 %v3699_v44 }
 0x1c3   :  { %2514 = vmatpush1.bf16.msra.mxu0 %v3694_v45  ;;  %v3776_v45 = vld [vmem:[#allocation10 + $0xf8] sm:$0xff]  }
 0x1c4   :  { %2555 = vmatpush1.bf16.msra.mxu1 %v3697_v46  ;;  %2515 = vmatprep.subr.bf16.mxu0 %v3702_v47  ;;  %v3778_v46 = vld [vmem:[#allocation10 + $0xf0] sm:$0xff]   ;;  %v3768_v47 = vld [vmem:[#allocation10 + $0x58] sm:$0xff]  }
 0x1c5   :  { %2556 = vmatprep.subr.bf16.mxu1 %v3705_v48  ;;  %v3779_v48 = vld [vmem:[#allocation10 + $0xb0] sm:$0xff]  }
 0x1c7   :  { %2516 = vmatpush1.bf16.msra.mxu0 %v3700_v49  ;;  %v3780_v49 = vld [vmem:[#allocation10 + $0xe8] sm:$0xff]  }
 0x1c8   :  { %2557 = vmatpush1.bf16.msra.mxu1 %v3703_v50  ;;  %2517 = vmatprep.subr.bf16.mxu0 %v3708_v51  ;;  %v3769_v50 = vld [vmem:[#allocation10 + $0x18] sm:$0xff]   ;;  %v3770_v51 = vld [vmem:[#allocation10 + $0x50] sm:$0xff]  }
 0x1c9   :  { %2558 = vmatprep.subr.bf16.mxu1 %v3711_v52  ;;  %v3781_v52 = vld [vmem:[#allocation10 + $0xa8] sm:$0xff]  }
 0x1cb   :  { %2518 = vmatpush1.bf16.msra.mxu0 %v3706_v53  ;;  %v3782_v53 = vld [vmem:[#allocation10 + $0xe0] sm:$0xff]  }
 0x1cc   :  { %2559 = vmatpush1.bf16.msra.mxu1 %v3709_v54  ;;  %2519 = vmatprep.subr.bf16.mxu0 %v3714_v55  ;;  %v3771_v54 = vld [vmem:[#allocation10 + $0x10] sm:$0xff]   ;;  %v3772_v55 = vld [vmem:[#allocation10 + $0x48] sm:$0xff]  }
 0x1cd   :  { %2560 = vmatprep.subr.bf16.mxu1 %v3717_v56  ;;  %v3783_v56 = vld [vmem:[#allocation10 + $0xa0] sm:$0xff]  }
 0x1cf   :  { %2520 = vmatpush2.bf16.msra.mxu0 %v3712_v57  ;;  %v3784_v57 = vld [vmem:[#allocation10 + $0xd8] sm:$0xff]  }
 0x1d0   :  { %2561 = vmatpush2.bf16.msra.mxu1 %v3715_v58  ;;  %2521 = vmatprep.subr.bf16.mxu0 %v3720_v59  ;;  %v3773_v58 = vld [vmem:[#allocation10 + $0x8] sm:$0xff]   ;;  %v3774_v59 = vld [vmem:[#allocation10 + $0x40] sm:$0xff]  }
 0x1d1   :  { %2562 = vmatprep.subr.bf16.mxu1 %v3723_v60  ;;  %v3785_v60 = vld [vmem:[#allocation10 + $0x98] sm:$0xff]  }
 0x1d3   :  { %2522 = vmatpush2.bf16.msra.mxu0 %v3718_v61  ;;  %v3775_v61 = vld [vmem:[#allocation10] sm:$0xff]  }
 0x1d4   :  { %2563 = vmatpush2.bf16.msra.mxu1 %v3721_v62  ;;  %2523 = vmatprep.subr.bf16.mxu0 %v3726_v63  ;;  %v955_v62 = vld [vmem:[%s4089_s4] sm:$0xf] }
 0x1d5   :  { %2564 = vmatprep.subr.bf16.mxu1 %v3729_v1  ;;  %v960_v63 = vrot.slane %v955_v62, %v161_v7  ;;  %v964_v1 = vrot.slane %v955_v62, %v165_v10  ;;  %v3788_v7 = vld [vmem:[#allocation10 + $0xc8] sm:$0xff]  }
 0x1d6   :  { %v3789_v10 = vld [vmem:[#allocation10 + $0x88] sm:$0xff]  }
 0x1d7   :  { %2524 = vmatpush2.bf16.msra.mxu0 %v3724_v3 }
 0x1d8   :  { %2565 = vmatpush2.bf16.msra.mxu1 %v3727_v8  ;;  %2525 = vmatprep.subr.bf16.mxu0 %v3732_v4 }
 0x1d9   :  { %2566 = vmatprep.subr.bf16.mxu1 %v3735_v13 }
 0x1db   :  { %2526 = vmatpush2.bf16.msra.mxu0 %v3730_v14  ;;  %v3786_v14 = vld [vmem:[#allocation10 + $0xd0] sm:$0xff]  }
 0x1dc   :  { %2567 = vmatpush2.bf16.msra.mxu1 %v3733_v5  ;;  %2527 = vmatprep.subr.bf16.mxu0 %v3738_v2 }
 0x1dd   :  { %2568 = vmatprep.subr.bf16.mxu1 %v3741_v17 }
 0x1df   :  { %2528 = vmatpush2.bf16.msra.mxu0 %v3736_v18  ;;  %v3787_v18 = vld [vmem:[#allocation10 + $0x90] sm:$0xff]  }
 0x1e0   :  { %2569 = vmatpush2.bf16.msra.mxu1 %v3739_v19  ;;  %2529 = vmatprep.subr.bf16.mxu0 %v3744_v20 }
 0x1e1   :  { %2570 = vmatprep.subr.bf16.mxu1 %v3747_v21 }
 0x1e3   :  { %2530 = vmatpush2.bf16.msra.mxu0 %v3742_v12 }
 0x1e4   :  { %2571 = vmatpush2.bf16.msra.mxu1 %v3745_v22  ;;  %2531 = vmatprep.subr.bf16.mxu0 %v3750_v23 }
 0x1e5   :  { %2572 = vmatprep.subr.bf16.mxu1 %v3753_v24 }
 0x1e7   :  { %2532 = vmatpush2.bf16.msra.mxu0 %v3748_v25 }
 0x1e8   :  { %2573 = vmatpush2.bf16.msra.mxu1 %v3751_v27  ;;  %2533 = vmatprep.subr.bf16.mxu0 %v3756_v28 }
 0x1e9   :  { %2574 = vmatprep.subr.bf16.mxu1 %v3759_v32 }
 0x1eb   :  { %2534 = vmatpush2.bf16.msra.mxu0 %v3754_v29  ;;  %v3790_v29 = vld [vmem:[#allocation10 + $0xc0] sm:$0xff]  }
 0x1ec   :  { %2575 = vmatpush2.bf16.msra.mxu1 %v3757_v33  ;;  %3319 = vmatprep.subr.bf16.mxu0 %v3760_v36  ;;  %v3791_v36 = vld [vmem:[#allocation10 + $0x80] sm:$0xff]  }
 0x1ed   :  { %3341 = vmatprep.subr.bf16.mxu1 %v3776_v45 }
 0x1ee   :  { %2536 = vmatmul.mubr.bf16.vlgmr.msra.gmra.mxu0 %v4056_v16  ;;  %v2291_v38 = vpop.f32.mrf.mxu0  ;;  %v2332_v35 = vpop.f32.mrf.mxu1  ;;  %v3777_v16 = vld [vmem:[#allocation10 + $0xb8] sm:$0xff]  }
 0x1ef   :  { %2577 = vmatmul.mubr.bf16.vlgmr.msra.gmra.mxu1 %v4054_v15  ;;  %3320 = vmatpush3.bf16.msra.mxu0 %v3761_v34  ;;  %v3767_v15 = vld [vmem:[#allocation10 + $0x20] sm:$0xff]   ;;  %v2292_v3 = vadd.f32 %v2291_v38, %v960_v63 }
 0x1f0   :  { %v2293_v31 = vpop.f32.mrf.mxu0  ;;  %3321 = vmatprep.subr.bf16.mxu0 %v3762_v37  ;;  %v2334_v26 = vpop.f32.mrf.mxu1  ;;  %3342 = vmatpush3.bf16.msra.mxu1 %v3777_v16 }
 0x1f1   :  { %3343 = vmatprep.subr.bf16.mxu1 %v3778_v46  ;;  %v2294_v8 = vadd.f32 %v2293_v31, %v964_v1  ;;  %v2333_v4 = vadd.f32 %v2332_v35, %v2292_v3 }
 0x1f2   :  { %v2295_v0 = vpop.f32.mrf.mxu0  ;;  %v2336_v41 = vpop.f32.mrf.mxu1 }
 0x1f3   :  { %3322 = vmatpush3.bf16.msra.mxu0 %v3763_v39  ;;  %v2335_v5 = vadd.f32 %v2334_v26, %v2294_v8  ;;  %v968_v41 = vrot.slane %v955_v62, %v169_v9 }
 0x1f4   :  { %v2296_v42 = vpop.f32.mrf.mxu0  ;;  %3323 = vmatprep.subr.bf16.mxu0 %v3764_v40  ;;  %v2337_v44 = vpop.f32.mrf.mxu1  ;;  %3344 = vmatpush3.bf16.msra.mxu1 %v3779_v48 }
 0x1f5   :  { %3345 = vmatprep.subr.bf16.mxu1 %v3780_v49 }
 0x1f7   :  { %3324 = vmatpush3.bf16.msra.mxu0 %v3765_v30  ;;  %v972_v30 = vrot.slane %v955_v62, %v173_v11  ;;  %v3286_v62 = vld [vmem:[%s4091_s6] ss:$0 sm:$0xff]  ;;  %s3936_s6 = smov [#allocation11]  }
 0x1f8   :  { %3325 = vmatprep.subr.bf16.mxu0 %v3766_v43  ;;  %3346 = vmatpush3.bf16.msra.mxu1 %v3781_v52  ;;  %s2955_s30 = sshll.u32 %s3936_s6, 4  ;;  %s2956_s30 = int_to_ptr.vmem [resolvable:$true] %s2955_s30 }
 0x1f9   :  { %3347 = vmatprep.subr.bf16.mxu1 %v3782_v53  ;;  %s3896_s8 = scalar_lea.vmem %s2956_s30, 128  ;;  %p3901_p12 = scmp.lt.s32.totalorder %s2956_s30, %s2956_s30 }
 0x1fa   :  { %p3897_p11 = scmp.ne.s32.totalorder %s2956_s30, %s3896_s8  ;;  %p3902_p13 = scmp.lt.s32.totalorder %s3896_s8, %s3896_s8 }
 0x1fb   :  { %3326 = vmatpush3.bf16.msra.mxu0 %v3767_v15 }
 0x1fc   :  { %3327 = vmatprep.subr.bf16.mxu0 %v3768_v47  ;;  %3348 = vmatpush3.bf16.msra.mxu1 %v3783_v56  ;;  %p3903_p0 = por %p3902_p13, %p3901_p12 }
 0x1fd   :  { %3349 = vmatprep.subr.bf16.mxu1 %v3784_v57 }
 0x1fe   :  { %p3904_p1 = pnand %p3903_p0, %p3897_p11 }
 0x1ff   :  { %3328 = vmatpush3.bf16.msra.mxu0 %v3769_v50 }
 0x200   :  { %3329 = vmatprep.subr.bf16.mxu0 %v3770_v51  ;;  %3350 = vmatpush3.bf16.msra.mxu1 %v3785_v60 }
 0x201   :  { %3351 = vmatprep.subr.bf16.mxu1 %v3786_v14 }
 0x203   :  { %3330 = vmatpush3.bf16.msra.mxu0 %v3771_v54 }
 0x204   :  { %3331 = vmatprep.subr.bf16.mxu0 %v3772_v55  ;;  %3352 = vmatpush3.bf16.msra.mxu1 %v3787_v18 }
 0x205   :  { %3353 = vmatprep.subr.bf16.mxu1 %v3788_v7 }
 0x207   :  { %3332 = vmatpush3.bf16.msra.mxu0 %v3773_v58 }
 0x208   :  { %3333 = vmatprep.subr.bf16.mxu0 %v3774_v59  ;;  %3354 = vmatpush3.bf16.msra.mxu1 %v3789_v10 }
 0x209   :  { %3355 = vmatprep.subr.bf16.mxu1 %v3790_v29 }
 0x20b   :  { %3334 = vmatpush3.bf16.msra.mxu0 %v3775_v61 }
 0x20c   :  { %3356 = vmatpush3.bf16.msra.mxu1 %v3791_v36 }
 0x22e   :  { %v2373_v13 = vpop.f32.mrf.mxu0  ;;  %v2414_v17 = vpop.f32.mrf.mxu1 }
 0x22f   :  { %v2374_v2 = vadd.f32 %v2373_v13, %v2333_v4 }
 0x230   :  { %v2375_v19 = vpop.f32.mrf.mxu0  ;;  %v2416_v12 = vpop.f32.mrf.mxu1 }
 0x231   :  { %v2415_v20 = vadd.f32 %v2414_v17, %v2374_v2  ;;  %v2376_v21 = vadd.f32 %v2375_v19, %v2335_v5 }
 0x232   :  { %v2377_v22 = vpop.f32.mrf.mxu0  ;;  %v2418_v24 = vpop.f32.mrf.mxu1 }
 0x233   :  { %v2417_v23 = vadd.f32 %v2416_v12, %v2376_v21  ;;  %v2585_v25 = vmax.f32 %v2415_v20, 0.0 }
 0x234   :  { %v2378_v27 = vpop.f32.mrf.mxu0  ;;  %v2419_v32 = vpop.f32.mrf.mxu1 }
 0x235   :  { %v2586_v28 = vmax.f32 %v2417_v23, 0.0  ;;  %v2589_v34 = vpack.c.bf16 %v2585_v25, %v2585_v25 }
 0x237   :  { %v2590_v33 = vpack.c.bf16 %v2586_v28, %v2586_v28 }
 0x239   :  { %2888 = vmatprep.mubr.bf16.mxu0 %v2590_v33 }
 0x23a   :  { %2889 = vmatmul.mubr.bf16.vlgmr.msra.gmra.mxu0 %v2589_v34 }
 0x26e   :  { %v2455_v37 = vpop.f32.mrf.mxu0 }
 0x26f   :  { %v2496_v38 = vpop.f32.mrf.mxu1  ;;  %v2456_v42 = vadd.f32 %v2455_v37, %v968_v41 }
 0x270   :  { %v2457_v35 = vpop.f32.mrf.mxu0 }
 0x271   :  { %v2498_v39 = vpop.f32.mrf.mxu1  ;;  %v2458_v43 = vadd.f32 %v2457_v35, %v972_v30  ;;  %v2497_v44 = vadd.f32 %v2496_v38, %v2456_v42 }
 0x272   :  { %v2459_v31 = vpop.f32.mrf.mxu0 }
 0x273   :  { %v2500_v40 = vpop.f32.mrf.mxu1  ;;  %v2499_v16 = vadd.f32 %v2498_v39, %v2458_v43 }
 0x274   :  { %v2460_v26 = vpop.f32.mrf.mxu0 }
 0x275   :  { %v2501_v0 = vpop.f32.mrf.mxu1 }
 0x2ae   :  { %v2537_v45 = vpop.f32.mrf.mxu0 }
 0x2af   :  { %v2538_v46 = vadd.f32 %v2537_v45, %v2497_v44  ;;  %v2578_v15 = vpop.f32.mrf.mxu1 }
 0x2b0   :  { %v2539_v47 = vpop.f32.mrf.mxu0 }
 0x2b1   :  { %v2579_v48 = vadd.f32 %v2578_v15, %v2538_v46  ;;  %v2540_v49 = vadd.f32 %v2539_v47, %v2499_v16  ;;  %v2580_v50 = vpop.f32.mrf.mxu1 }
 0x2b2   :  { %v2541_v51 = vpop.f32.mrf.mxu0 }
 0x2b3   :  { %v2581_v52 = vadd.f32 %v2580_v50, %v2540_v49  ;;  %v2582_v53 = vpop.f32.mrf.mxu1  ;;  %v2587_v54 = vmax.f32 %v2579_v48, 0.0 }
 0x2b4   :  { %v2542_v55 = vpop.f32.mrf.mxu0 }
 0x2b5   :  { %v2588_v9 = vmax.f32 %v2581_v52, 0.0  ;;  %v2583_v56 = vpop.f32.mrf.mxu1  ;;  %v2591_v11 = vpack.c.bf16 %v2587_v54, %v2587_v54 }
 0x2b7   :  { %v2592_v6 = vpack.c.bf16 %v2588_v9, %v2588_v9 }
 0x2b9   :  { %2928 = vmatprep.mubr.bf16.mxu1 %v2592_v6 }
 0x2ba   :  { %2929 = vmatmul.mubr.bf16.vlgmr.msra.gmra.mxu1 %v2591_v11 }
 0x2fa   :  { %v3335_v57 = vpop.f32.mrf.mxu0 }
 0x2fc   :  { %v3336_v58 = vpop.f32.mrf.mxu0 }
 0x2fd   :  { %v3337_v59 = vadd.f32 %v3336_v58, %v3335_v57 }
 0x2fe   :  { %v3338_v60 = vpop.f32.mrf.mxu0 }
 0x2ff   :  { %v2891_v3 = vadd.f32 %v3337_v59, %v3286_v62 }
 0x300   :  { %v3339_v61 = vpop.f32.mrf.mxu0 }
 0x37a   :  { %v3357_v63 = vpop.f32.mrf.mxu1 }
 0x37c   :  { %v3358_v1 = vpop.f32.mrf.mxu1 }
 0x37d   :  { %v3359_v8 = vadd.f32 %v3358_v1, %v3357_v63 }
 0x37e   :  { %v3360_v4 = vpop.f32.mrf.mxu1 }
 0x37f   :  { %v2931_v13 = vadd.f32 %v3359_v8, %v2891_v3 }
 0x380   :  { %v3361_v14 = vpop.f32.mrf.mxu1 }
 0x381   :  { %2936 = vmax.xlane.f32.xlu0 %v2931_v13 }
 0x40a   :  { %v2937_v5 = vpop.xlane.xlu0 %2936 }
 0x40b   :  { %v2938_v2 = vsub.f32 %v2931_v13, %v2937_v5 }
 0x40d   :  { %v2939_v17 = vmul.f32 1.442695, %v2938_v2 }
 0x40f   :  { %3792 = vpow2.f32 %v2939_v17 }
 0x41c   :  { %v3793_v18 = vpop.eup %3792 }
 0x41d   :  { %2941 = vadd.xlane.f32.xlu0 %v3793_v18 }
 0x4a6   :  { %v2942_v19 = vpop.xlane.xlu0 %2941 }
 0x4a7   :  { %3794 = vrcp.f32 %v2942_v19 }
 0x4b4   :  { %v3795_v20 = vpop.eup %3794 }
 0x4b5   :  { %v2944_v21 = vmul.f32 %v3795_v20, %v2942_v19 }
 0x4b7   :  { %v2945_v12 = vsub.f32 2.0, %v2944_v21 }
 0x4b9   :  { %v2946_v22 = vmul.f32 %v3795_v20, %v2945_v12 }
 0x4bb   :  { %v2947_v7 = vmul.f32 %v3793_v18, %v2946_v22 }
 0x4bd   :  { %2948 = vst [vmem:[#allocation11] sm:$0xff] %v2947_v7 }
 0x4be   :  { %3907 = shalt.err (!%p3904_p1)
}
 0x4bf   :  { %2958 = dma.vmem_to_hbm [thread:$0]  %s2956_s30, 128, %s4092_s7, [#allocation4]  }
 0x4c0   :  { %3922 = dma.done.wait [#allocation4], 128  }
 0x4c1   :  { %3923 = vsyncadd [#allocation4], 4294967168 }
 0x4c2   :  { %2962 = vsyncpa [#allocation3], 1 }
 0x4c3   :  { %2963 = vsyncpa [#allocation6], 1 }
 0x4c4   :  { %2964 = vsyncpa [#allocation9], 1 }
 0x4c5   :  { %2965 = vsyncpa [#allocation4], 1 }

</bundles_post_ra>
